<compile_context>
chip_gen: v7x
topology: tpu7x:2x2x1
jax: 0.10.0
libtpu: 0.0.40
codegen_flags: <defaults>
</compile_context>

<pallas_src>
import functools
import math

import jax
import jax.numpy as jnp
from jax.experimental import pallas as pl
from jax.experimental.pallas import tpu as pltpu


# ---------------------------------------------------------------------------
# In-kernel helpers
# ---------------------------------------------------------------------------
def _layernorm(x, w, b, eps=1e-5):
    # x: (R, D) f32, w/b: (1, D) f32
    mu = jnp.mean(x, axis=-1, keepdims=True)
    var = jnp.mean((x - mu) ** 2, axis=-1, keepdims=True)
    return (x - mu) * jax.lax.rsqrt(var + eps) * w + b


# ---------------------------------------------------------------------------
# Fused whole-model kernel: grid = (batch [parallel], layer [arbitrary])
# ---------------------------------------------------------------------------
def fused_decoder_kernel(x_ref, vec_ref, wqkv_ref, wo_ref, w1_ref, w2_ref,
                         lnfw_ref, lnfb_ref, o_ref, x_sc, *, n_head):
    layer = pl.program_id(1)
    n_layer = pl.num_programs(1)
    R, D = x_sc.shape                       # R = tokens of this batch element
    hs = D // n_head
    scale = 1.0 / math.sqrt(hs)

    @pl.when(layer == 0)
    def _init():
        # Resident activations for this batch block (kept in VMEM across all layers).
        x_sc[...] = x_ref[...].astype(jnp.float32)

    x = x_sc[...]                           # (R, D) f32

    # Packed per-layer small vectors: one DMA descriptor per layer.
    vecs = vec_ref[0]                       # (8, 4D) f32
    ln1w, ln1b = vecs[0:1, :D], vecs[1:2, :D]
    bo = vecs[2:3, :D]
    ln2w, ln2b = vecs[3:4, :D], vecs[4:5, :D]
    b2 = vecs[5:6, :D]
    b1 = vecs[6:7, :]                       # (1, 4D)

    # --- attention sub-block ---
    h = _layernorm(x, ln1w, ln1b).astype(jnp.bfloat16)
    qkv = jnp.dot(h, wqkv_ref[0], preferred_element_type=jnp.float32)     # (R, 3D) f32

    # Lane-aligned 128-wide slices, then one reshape/transpose relayout per tensor.
    # 1/sqrt(hs) folded into q (O(R*D) f32 mults instead of O(H*R^2)).
    q = (qkv[:, :D] * scale).astype(jnp.bfloat16).reshape(R, n_head, hs).transpose(1, 0, 2)
    k = qkv[:, D:2 * D].astype(jnp.bfloat16).reshape(R, n_head, hs).transpose(1, 0, 2)
    v = qkv[:, 2 * D:].astype(jnp.bfloat16).reshape(R, n_head, hs).transpose(1, 0, 2)

    s = jnp.einsum("hqd,hkd->hqk", q, k,
                   preferred_element_type=jnp.float32)                    # (H, R, R) f32

    # Causal mask recomputed from iota (no VMEM scratch, hides under MXU slack).
    row = jax.lax.broadcasted_iota(jnp.int32, (R, R), 0)
    col = jax.lax.broadcasted_iota(jnp.int32, (R, R), 1)
    s = jnp.where((col <= row)[None, :, :], s, -1e30)

    s = s - jnp.max(s, axis=-1, keepdims=True)
    p = jnp.exp(s)
    denom = jnp.sum(p, axis=-1, keepdims=True)                            # (H, R, 1) f32

    a = jnp.einsum("hqk,hkd->hqd", p.astype(jnp.bfloat16), v,
                   preferred_element_type=jnp.float32)                    # (H, R, hs) f32
    # Deferred softmax normalization on the small output tensor, divide -> EUP.
    a = a * pl.reciprocal(denom, approx=True)
    a = a.transpose(1, 0, 2).reshape(R, D)                                # merge heads: 1 relayout

    attn = jnp.dot(a.astype(jnp.bfloat16), wo_ref[0],
                   preferred_element_type=jnp.float32) + bo
    x = x + attn

    # --- MLP sub-block ---
    h2 = _layernorm(x, ln2w, ln2b).astype(jnp.bfloat16)
    ff = jnp.dot(h2, w1_ref[0], preferred_element_type=jnp.float32) + b1
    ff = jnp.maximum(ff, 0.0).astype(jnp.bfloat16)
    ff = jnp.dot(ff, w2_ref[0], preferred_element_type=jnp.float32) + b2
    x = x + ff

    # Residual stream kept f32 (cheap here; re-check tolerance before narrowing to bf16).
    x_sc[...] = x

    @pl.when(layer == n_layer - 1)
    def _final():
        o_ref[...] = _layernorm(x, lnfw_ref[...], lnfb_ref[...]).astype(o_ref.dtype)


# ---------------------------------------------------------------------------
# Wrapper
# ---------------------------------------------------------------------------
def decoder_transformer_forward(x, params, n_head):
    B, T, D = x.shape
    L = params["wqkv"].shape[0]
    H4 = params["w1"].shape[-1]
    xf = x.reshape(B * T, D)

    # Pack the seven small per-layer vectors into one (L, 8, H4) array.
    vec = jnp.zeros((L, 8, H4), jnp.float32)
    vec = vec.at[:, 0, :D].set(params["ln1_w"][:, 0])
    vec = vec.at[:, 1, :D].set(params["ln1_b"][:, 0])
    vec = vec.at[:, 2, :D].set(params["bo"][:, 0])
    vec = vec.at[:, 3, :D].set(params["ln2_w"][:, 0])
    vec = vec.at[:, 4, :D].set(params["ln2_b"][:, 0])
    vec = vec.at[:, 5, :D].set(params["b2"][:, 0])
    vec = vec.at[:, 6, :].set(params["b1"][:, 0])

    def wspec(*dims):                       # per-layer weight: (L, *dims), block (1, *dims)
        nd = len(dims)
        return pl.BlockSpec((1,) + dims, lambda b, l, nd=nd: (l,) + (0,) * nd)

    kernel = functools.partial(fused_decoder_kernel, n_head=n_head)
    out = pl.pallas_call(
        kernel,
        out_shape=jax.ShapeDtypeStruct((B * T, D), x.dtype),
        grid=(B, L),                         # batch parallel (megacore), layers arbitrary
        in_specs=[
            pl.BlockSpec((T, D), lambda b, l: (b, 0)),     # x rows of batch element b
            wspec(8, H4),                                   # packed LN/bias vectors
            wspec(D, 3 * D),                                # fused Wqkv (bf16)
            wspec(D, D),                                    # Wo (bf16)
            wspec(D, H4),                                   # W1 (bf16)
            wspec(H4, D),                                   # W2 (bf16)
            pl.BlockSpec((1, D), lambda b, l: (0, 0)),      # ln_f w
            pl.BlockSpec((1, D), lambda b, l: (0, 0)),      # ln_f b
        ],
        out_specs=pl.BlockSpec((T, D), lambda b, l: (b, 0)),
        scratch_shapes=[pltpu.VMEM((T, D), jnp.float32)],   # resident activations per batch block
        compiler_params=pltpu.CompilerParams(
            dimension_semantics=("parallel", "arbitrary"),
            vmem_limit_bytes=48 * 1024 * 1024),             # explicit; fits v7x's 64 MiB VMEM
    )(xf, vec, params["wqkv"], params["wo"], params["w1"], params["w2"],
      params["lnf_w"], params["lnf_b"])
    return out.reshape(B, T, D)


# ---------------------------------------------------------------------------
# Pure-JAX reference (same math & same bf16/f32 precision policy)
# ---------------------------------------------------------------------------
def reference_forward(x, params, n_head):
    def ln(v, w, b, eps=1e-5):
        mu = jnp.mean(v, axis=-1, keepdims=True)
        var = jnp.mean((v - mu) ** 2, axis=-1, keepdims=True)
        return (v - mu) * jax.lax.rsqrt(var + eps) * w + b

    B, T, D = x.shape
    hs = D // n_head
    scale = 1.0 / math.sqrt(hs)
    causal = jnp.where(jnp.tril(jnp.ones((T, T), bool)), 0.0, -1e30).astype(jnp.float32)
    L = params["wqkv"].shape[0]
    x = x.astype(jnp.float32)
    for l in range(L):
        h = ln(x, params["ln1_w"][l], params["ln1_b"][l]).astype(jnp.bfloat16)
        qkv = jnp.einsum("btd,de->bte", h, params["wqkv"][l],
                         preferred_element_type=jnp.float32)
        q = qkv[..., :D].reshape(B, T, n_head, hs).astype(jnp.bfloat16)
        k = qkv[..., D:2 * D].reshape(B, T, n_head, hs).astype(jnp.bfloat16)
        v = qkv[..., 2 * D:].reshape(B, T, n_head, hs).astype(jnp.bfloat16)
        s = jnp.einsum("bthd,bshd->bhts", q, k, preferred_element_type=jnp.float32) * scale
        s = s + causal
        s = s - jnp.max(s, axis=-1, keepdims=True)
        p = jnp.exp(s)
        p = p / jnp.sum(p, axis=-1, keepdims=True)
        a = jnp.einsum("bhts,bshd->bthd", p.astype(jnp.bfloat16), v,
                       preferred_element_type=jnp.float32).reshape(B, T, D)
        x = x + (jnp.einsum("btd,de->bte", a.astype(jnp.bfloat16), params["wo"][l],
                            preferred_element_type=jnp.float32) + params["bo"][l])
        h2 = ln(x, params["ln2_w"][l], params["ln2_b"][l]).astype(jnp.bfloat16)
        ff = jnp.einsum("btd,dh->bth", h2, params["w1"][l],
                        preferred_element_type=jnp.float32) + params["b1"][l]
        ff = jnp.maximum(ff, 0.0).astype(jnp.bfloat16)
        ff = jnp.einsum("bth,hd->btd", ff, params["w2"][l],
                        preferred_element_type=jnp.float32) + params["b2"][l]
        x = x + ff
    return ln(x, params["lnf_w"], params["lnf_b"])


# ---------------------------------------------------------------------------
# Deterministic parameter construction (weights stacked over layers, bf16)
# Non-trivial LN/bias values so the packed-vector path is actually exercised.
# ---------------------------------------------------------------------------
def init_params(key, n_layer, D):
    H4 = 4 * D
    ks = jax.random.split(key, 13)

    def nrm(k, shape, s=0.02):
        return s * jax.random.normal(k, shape, jnp.float32)

    params = {
        "ln1_w": 1.0 + 0.1 * jax.random.normal(ks[0], (n_layer, 1, D), jnp.float32),
        "ln1_b": 0.1 * jax.random.normal(ks[1], (n_layer, 1, D), jnp.float32),
        "wqkv": nrm(ks[2], (n_layer, D, 3 * D)).astype(jnp.bfloat16),
        "wo": nrm(ks[3], (n_layer, D, D)).astype(jnp.bfloat16),
        "bo": 0.02 * jax.random.normal(ks[4], (n_layer, 1, D), jnp.float32),
        "ln2_w": 1.0 + 0.1 * jax.random.normal(ks[5], (n_layer, 1, D), jnp.float32),
        "ln2_b": 0.1 * jax.random.normal(ks[6], (n_layer, 1, D), jnp.float32),
        "w1": nrm(ks[7], (n_layer, D, H4)).astype(jnp.bfloat16),
        "b1": 0.02 * jax.random.normal(ks[8], (n_layer, 1, H4), jnp.float32),
        "w2": nrm(ks[9], (n_layer, H4, D)).astype(jnp.bfloat16),
        "b2": 0.02 * jax.random.normal(ks[10], (n_layer, 1, D), jnp.float32),
        "lnf_w": 1.0 + 0.1 * jax.random.normal(ks[11], (1, D), jnp.float32),
        "lnf_b": 0.1 * jax.random.normal(ks[12], (1, D), jnp.float32),
    }
    return params


if __name__ == "__main__":
    # Module hyperparameters (small, consistent with the forward pass):
    vocab_size = 64            # unused in forward()
    block_size = 8             # T
    patch_size = 4
    n_embd = 32                # D = n_embd * patch_size = 128
    n_head = 4
    n_layer = 2
    dropout = 0.0              # inference: dropout is identity

    B, T, D = 2, block_size, n_embd * patch_size

    key = jax.random.PRNGKey(0)
    key, pk, xk = jax.random.split(key, 3)
    params = init_params(pk, n_layer, D)
    # forward() takes already-embedded activations of shape (B, T, n_embd*patch_size)
    x = jax.random.normal(xk, (B, T, D), jnp.float32)

    out = decoder_transformer_forward(x, params, n_head)
    out = jax.block_until_ready(out)

    ref = reference_forward(x, params, n_head)
    assert out.shape == (B, T, D)
    max_err = float(jnp.max(jnp.abs(out - ref)))
    # Tolerance covers bf16 rounding-order differences + approx EUP reciprocal in the kernel.
    assert jnp.allclose(out, ref, atol=3e-3, rtol=3e-3), \
        f"mismatch vs reference (max abs err {max_err})"

    print("KERNEL_OK")
</pallas_src>

<mosaic_0001>
module attributes {stable_mosaic.version = 11 : i64} {
  func.func @fused_decoder_kernel(%arg0: i32, %arg1: i32, %arg2: memref<8x128xf32, #tpu.memory_space<vmem>>, %arg3: memref<1x8x512xf32, #tpu.memory_space<vmem>>, %arg4: memref<1x128x384xbf16, #tpu.memory_space<vmem>>, %arg5: memref<1x128x128xbf16, #tpu.memory_space<vmem>>, %arg6: memref<1x128x512xbf16, #tpu.memory_space<vmem>>, %arg7: memref<1x512x128xbf16, #tpu.memory_space<vmem>>, %arg8: memref<1x128xf32, #tpu.memory_space<vmem>>, %arg9: memref<1x128xf32, #tpu.memory_space<vmem>>, %arg10: memref<8x128xf32, #tpu.memory_space<vmem>>, %arg11: memref<8x128xf32, #tpu.memory_space<vmem>>) attributes {dimension_semantics = [#tpu.dimension_semantics<parallel>, #tpu.dimension_semantics<arbitrary>], iteration_bounds = array<i64: 2, 2>, scalar_prefetch = 0 : i64, scratch_operands = 1 : i64, tpu.core_type = #tpu.core_type<tc>, window_params = [{transform_indices = @transform_0, window_bounds = array<i64: 8, 128>}, {transform_indices = @transform_1, window_bounds = array<i64: 1, 8, 512>}, {transform_indices = @transform_2, window_bounds = array<i64: 1, 128, 384>}, {transform_indices = @transform_3, window_bounds = array<i64: 1, 128, 128>}, {transform_indices = @transform_4, window_bounds = array<i64: 1, 128, 512>}, {transform_indices = @transform_5, window_bounds = array<i64: 1, 512, 128>}, {pipeline_mode = #tpu.pipeline_mode<synchronous>, transform_indices = @transform_6, window_bounds = array<i64: 1, 128>}, {pipeline_mode = #tpu.pipeline_mode<synchronous>, transform_indices = @transform_7, window_bounds = array<i64: 1, 128>}, {transform_indices = @transform_8, window_bounds = array<i64: 8, 128>}]} {
    %c0_i32 = arith.constant 0 : i32
    %0 = arith.cmpi eq, %arg1, %c0_i32 : i32
    %1 = arith.extui %0 : i1 to i32
    %c0_i32_0 = arith.constant 0 : i32
    %2 = arith.cmpi ne, %1, %c0_i32_0 : i32
    scf.if %2 {
      %c0_40 = arith.constant 0 : index
      %c0_41 = arith.constant 0 : index
      %124 = vector.load %arg2[%c0_40, %c0_41] : memref<8x128xf32, #tpu.memory_space<vmem>>, vector<8x128xf32>
      %c0_42 = arith.constant 0 : index
      %c0_43 = arith.constant 0 : index
      %125 = vector.load %arg11[%c0_42, %c0_43] : memref<8x128xf32, #tpu.memory_space<vmem>>, vector<8x128xf32>
      tpu.vector_store %arg11[%c0_42, %c0_43], %124 {strides = array<i32>} : memref<8x128xf32, #tpu.memory_space<vmem>>, vector<8x128xf32>,
    } else {
    }
    %c0 = arith.constant 0 : index
    %c0_1 = arith.constant 0 : index
    %3 = vector.load %arg11[%c0, %c0_1] : memref<8x128xf32, #tpu.memory_space<vmem>>, vector<8x128xf32>
    %c0_2 = arith.constant 0 : index
    %c0_3 = arith.constant 0 : index
    %c0_4 = arith.constant 0 : index
    %4 = vector.load %arg3[%c0_2, %c0_3, %c0_4] : memref<1x8x512xf32, #tpu.memory_space<vmem>>, vector<1x8x512xf32>
    %5 = vector.shape_cast %4 : vector<1x8x512xf32> to vector<8x512xf32>
    %6 = vector.extract_strided_slice %5 {offsets = [0, 0], sizes = [1, 128], strides = [1, 1]} : vector<8x512xf32> to vector<1x128xf32>
    %7 = vector.extract_strided_slice %5 {offsets = [1, 0], sizes = [1, 128], strides = [1, 1]} : vector<8x512xf32> to vector<1x128xf32>
    %8 = vector.extract_strided_slice %5 {offsets = [2, 0], sizes = [1, 128], strides = [1, 1]} : vector<8x512xf32> to vector<1x128xf32>
    %9 = vector.extract_strided_slice %5 {offsets = [3, 0], sizes = [1, 128], strides = [1, 1]} : vector<8x512xf32> to vector<1x128xf32>
    %10 = vector.extract_strided_slice %5 {offsets = [4, 0], sizes = [1, 128], strides = [1, 1]} : vector<8x512xf32> to vector<1x128xf32>
    %11 = vector.extract_strided_slice %5 {offsets = [5, 0], sizes = [1, 128], strides = [1, 1]} : vector<8x512xf32> to vector<1x128xf32>
    %12 = vector.extract_strided_slice %5 {offsets = [6, 0], sizes = [1, 512], strides = [1, 1]} : vector<8x512xf32> to vector<1x512xf32>
    %cst = arith.constant dense<0.000000e+00> : vector<8xf32>
    %13 = vector.multi_reduction <add>, %3, %cst [1] : vector<8x128xf32> to vector<8xf32>
    %14 = vector.shape_cast %13 : vector<8xf32> to vector<8x1xf32>
    %cst_5 = arith.constant 1.280000e+02 : f32
    %15 = vector.broadcast %cst_5 : f32 to vector<8x1xf32>
    %16 = arith.divf %14, %15 : vector<8x1xf32>
    %17 = vector.broadcast %16 : vector<8x1xf32> to vector<8x128xf32>
    %18 = arith.subf %3, %17 : vector<8x128xf32>
    %19 = arith.mulf %18, %18 : vector<8x128xf32>
    %cst_6 = arith.constant dense<0.000000e+00> : vector<8xf32>
    %20 = vector.multi_reduction <add>, %19, %cst_6 [1] : vector<8x128xf32> to vector<8xf32>
    %21 = vector.shape_cast %20 : vector<8xf32> to vector<8x1xf32>
    %cst_7 = arith.constant 1.280000e+02 : f32
    %22 = vector.broadcast %cst_7 : f32 to vector<8x1xf32>
    %23 = arith.divf %21, %22 : vector<8x1xf32>
    %24 = vector.broadcast %16 : vector<8x1xf32> to vector<8x128xf32>
    %25 = arith.subf %3, %24 : vector<8x128xf32>
    %cst_8 = arith.constant 9.99999974E-6 : f32
    %26 = vector.broadcast %cst_8 : f32 to vector<8x1xf32>
    %27 = arith.addf %23, %26 : vector<8x1xf32>
    %28 = math.rsqrt %27 : vector<8x1xf32>
    %29 = vector.broadcast %28 : vector<8x1xf32> to vector<8x128xf32>
    %30 = arith.mulf %25, %29 : vector<8x128xf32>
    %31 = vector.broadcast %6 : vector<1x128xf32> to vector<8x128xf32>
    %32 = arith.mulf %30, %31 : vector<8x128xf32>
    %33 = vector.broadcast %7 : vector<1x128xf32> to vector<8x128xf32>
    %34 = arith.addf %32, %33 : vector<8x128xf32>
    %35 = arith.truncf %34 : vector<8x128xf32> to vector<8x128xbf16>
    %c0_9 = arith.constant 0 : index
    %c0_10 = arith.constant 0 : index
    %c0_11 = arith.constant 0 : index
    %36 = vector.load %arg4[%c0_9, %c0_10, %c0_11] : memref<1x128x384xbf16, #tpu.memory_space<vmem>>, vector<1x128x384xbf16>
    %37 = vector.shape_cast %36 : vector<1x128x384xbf16> to vector<128x384xbf16>
    %cst_12 = arith.constant dense<0.000000e+00> : vector<8x384xf32>
    %38 = tpu.matmul %35, %37, %cst_12 {dimension_numbers = #tpu.dot_dimension_numbers<[1], [0], [0], [1], [0, 0, 1, 1], [], []>} : vector<8x128xbf16>, vector<128x384xbf16>, vector<8x384xf32> -> vector<8x384xf32>
    %39 = vector.extract_strided_slice %38 {offsets = [0, 0], sizes = [8, 128], strides = [1, 1]} : vector<8x384xf32> to vector<8x128xf32>
    %cst_13 = arith.constant 0.176776692 : f32
    %40 = vector.broadcast %cst_13 : f32 to vector<8x128xf32>
    %41 = arith.mulf %39, %40 : vector<8x128xf32>
    %42 = arith.truncf %41 : vector<8x128xf32> to vector<8x128xbf16>
    %43 = vector.shape_cast %42 : vector<8x128xbf16> to vector<8x4x32xbf16>
    %44 = tpu.transpose %43, [1, 0, 2] : vector<8x4x32xbf16> -> vector<4x8x32xbf16>
    %45 = vector.extract_strided_slice %38 {offsets = [0, 128], sizes = [8, 128], strides = [1, 1]} : vector<8x384xf32> to vector<8x128xf32>
    %46 = arith.truncf %45 : vector<8x128xf32> to vector<8x128xbf16>
    %47 = vector.shape_cast %46 : vector<8x128xbf16> to vector<8x4x32xbf16>
    %48 = tpu.transpose %47, [1, 0, 2] : vector<8x4x32xbf16> -> vector<4x8x32xbf16>
    %49 = vector.extract_strided_slice %38 {offsets = [0, 256], sizes = [8, 128], strides = [1, 1]} : vector<8x384xf32> to vector<8x128xf32>
    %50 = arith.truncf %49 : vector<8x128xf32> to vector<8x128xbf16>
    %51 = vector.shape_cast %50 : vector<8x128xbf16> to vector<8x4x32xbf16>
    %52 = tpu.transpose %51, [1, 0, 2] : vector<8x4x32xbf16> -> vector<4x8x32xbf16>
    "tpu.trace_start"() <{level = 10 : i32, message = "hqd,hkd->hqk"}> : () -> ()
    %cst_14 = arith.constant dense<0.000000e+00> : vector<4x8x8xf32>
    %53 = tpu.matmul %44, %48, %cst_14 {dimension_numbers = #tpu.dot_dimension_numbers<[2], [2], [1], [1], [0, 0, 0, 1, 1, 1], [0], [0]>} : vector<4x8x32xbf16>, vector<4x8x32xbf16>, vector<4x8x8xf32> -> vector<4x8x8xf32>
    "tpu.trace_stop"() : () -> ()
    %54 = tpu.iota {dimensions = array<i32: 0>} : vector<8x8xi32>
    %55 = tpu.iota {dimensions = array<i32: 1>} : vector<8x8xi32>
    %56 = arith.cmpi sle, %55, %54 : vector<8x8xi32>
    %57 = vector.shape_cast %56 : vector<8x8xi1> to vector<1x8x8xi1>
    %cst_15 = arith.constant -1.000000e+30 : f32
    %58 = vector.shape_cast %57 : vector<1x8x8xi1> to vector<1x8x8xi1>
    %59 = vector.broadcast %58 : vector<1x8x8xi1> to vector<4x8x8xi1>
    %60 = vector.broadcast %cst_15 : f32 to vector<4x8x8xf32>
    %61 = arith.select %59, %53, %60 : vector<4x8x8xi1>, vector<4x8x8xf32>
    %cst_16 = arith.constant dense<0xFF800000> : vector<4x8xf32>
    %62 = vector.multi_reduction <maximumf>, %61, %cst_16 [2] : vector<4x8x8xf32> to vector<4x8xf32>
    %63 = vector.shape_cast %62 : vector<4x8xf32> to vector<4x8x1xf32>
    %64 = vector.broadcast %63 : vector<4x8x1xf32> to vector<4x8x8xf32>
    %65 = arith.subf %61, %64 : vector<4x8x8xf32>
    %66 = math.exp %65 : vector<4x8x8xf32>
    %cst_17 = arith.constant dense<0.000000e+00> : vector<4x8xf32>
    %67 = vector.multi_reduction <add>, %66, %cst_17 [2] : vector<4x8x8xf32> to vector<4x8xf32>
    %68 = vector.shape_cast %67 : vector<4x8xf32> to vector<4x8x1xf32>
    %69 = arith.truncf %66 : vector<4x8x8xf32> to vector<4x8x8xbf16>
    "tpu.trace_start"() <{level = 10 : i32, message = "hqk,hkd->hqd"}> : () -> ()
    %cst_18 = arith.constant dense<0.000000e+00> : vector<4x8x32xf32>
    %70 = tpu.matmul %69, %52, %cst_18 {dimension_numbers = #tpu.dot_dimension_numbers<[2], [1], [1], [2], [0, 0, 0, 1, 1, 2], [0], [0]>} : vector<4x8x8xbf16>, vector<4x8x32xbf16>, vector<4x8x32xf32> -> vector<4x8x32xf32>
    "tpu.trace_stop"() : () -> ()
    %71 = tpu.reciprocal %68 {approx = true} : vector<4x8x1xf32> -> vector<4x8x1xf32>
    %72 = vector.broadcast %71 : vector<4x8x1xf32> to vector<4x8x32xf32>
    %73 = arith.mulf %70, %72 : vector<4x8x32xf32>
    %74 = tpu.transpose %73, [1, 0, 2] : vector<4x8x32xf32> -> vector<8x4x32xf32>
    %75 = vector.shape_cast %74 : vector<8x4x32xf32> to vector<8x128xf32>
    %76 = arith.truncf %75 : vector<8x128xf32> to vector<8x128xbf16>
    %c0_19 = arith.constant 0 : index
    %c0_20 = arith.constant 0 : index
    %c0_21 = arith.constant 0 : index
    %77 = vector.load %arg5[%c0_19, %c0_20, %c0_21] : memref<1x128x128xbf16, #tpu.memory_space<vmem>>, vector<1x128x128xbf16>
    %78 = vector.shape_cast %77 : vector<1x128x128xbf16> to vector<128x128xbf16>
    %cst_22 = arith.constant dense<0.000000e+00> : vector<8x128xf32>
    %79 = tpu.matmul %76, %78, %cst_22 {dimension_numbers = #tpu.dot_dimension_numbers<[1], [0], [0], [1], [0, 0, 1, 1], [], []>} : vector<8x128xbf16>, vector<128x128xbf16>, vector<8x128xf32> -> vector<8x128xf32>
    %80 = vector.broadcast %8 : vector<1x128xf32> to vector<8x128xf32>
    %81 = arith.addf %79, %80 : vector<8x128xf32>
    %82 = arith.addf %3, %81 : vector<8x128xf32>
    %cst_23 = arith.constant dense<0.000000e+00> : vector<8xf32>
    %83 = vector.multi_reduction <add>, %82, %cst_23 [1] : vector<8x128xf32> to vector<8xf32>
    %84 = vector.shape_cast %83 : vector<8xf32> to vector<8x1xf32>
    %cst_24 = arith.constant 1.280000e+02 : f32
    %85 = vector.broadcast %cst_24 : f32 to vector<8x1xf32>
    %86 = arith.divf %84, %85 : vector<8x1xf32>
    %87 = vector.broadcast %86 : vector<8x1xf32> to vector<8x128xf32>
    %88 = arith.subf %82, %87 : vector<8x128xf32>
    %89 = arith.mulf %88, %88 : vector<8x128xf32>
    %cst_25 = arith.constant dense<0.000000e+00> : vector<8xf32>
    %90 = vector.multi_reduction <add>, %89, %cst_25 [1] : vector<8x128xf32> to vector<8xf32>
    %91 = vector.shape_cast %90 : vector<8xf32> to vector<8x1xf32>
    %cst_26 = arith.constant 1.280000e+02 : f32
    %92 = vector.broadcast %cst_26 : f32 to vector<8x1xf32>
    %93 = arith.divf %91, %92 : vector<8x1xf32>
    %94 = vector.broadcast %86 : vector<8x1xf32> to vector<8x128xf32>
    %95 = arith.subf %82, %94 : vector<8x128xf32>
    %cst_27 = arith.constant 9.99999974E-6 : f32
    %96 = vector.broadcast %cst_27 : f32 to vector<8x1xf32>
    %97 = arith.addf %93, %96 : vector<8x1xf32>
    %98 = math.rsqrt %97 : vector<8x1xf32>
    %99 = vector.broadcast %98 : vector<8x1xf32> to vector<8x128xf32>
    %100 = arith.mulf %95, %99 : vector<8x128xf32>
    %101 = vector.broadcast %9 : vector<1x128xf32> to vector<8x128xf32>
    %102 = arith.mulf %100, %101 : vector<8x128xf32>
    %103 = vector.broadcast %10 : vector<1x128xf32> to vector<8x128xf32>
    %104 = arith.addf %102, %103 : vector<8x128xf32>
    %105 = arith.truncf %104 : vector<8x128xf32> to vector<8x128xbf16>
    %c0_28 = arith.constant 0 : index
    %c0_29 = arith.constant 0 : index
    %c0_30 = arith.constant 0 : index
    %106 = vector.load %arg6[%c0_28, %c0_29, %c0_30] : memref<1x128x512xbf16, #tpu.memory_space<vmem>>, vector<1x128x512xbf16>
    %107 = vector.shape_cast %106 : vector<1x128x512xbf16> to vector<128x512xbf16>
    %cst_31 = arith.constant dense<0.000000e+00> : vector<8x512xf32>
    %108 = tpu.matmul %105, %107, %cst_31 {dimension_numbers = #tpu.dot_dimension_numbers<[1], [0], [0], [1], [0, 0, 1, 1], [], []>} : vector<8x128xbf16>, vector<128x512xbf16>, vector<8x512xf32> -> vector<8x512xf32>
    %109 = vector.broadcast %12 : vector<1x512xf32> to vector<8x512xf32>
    %110 = arith.addf %108, %109 : vector<8x512xf32>
    %cst_32 = arith.constant 0.000000e+00 : f32
    %111 = vector.broadcast %cst_32 : f32 to vector<8x512xf32>
    %112 = arith.maximumf %110, %111 : vector<8x512xf32>
    %113 = arith.truncf %112 : vector<8x512xf32> to vector<8x512xbf16>
    %c0_33 = arith.constant 0 : index
    %c0_34 = arith.constant 0 : index
    %c0_35 = arith.constant 0 : index
    %114 = vector.load %arg7[%c0_33, %c0_34, %c0_35] : memref<1x512x128xbf16, #tpu.memory_space<vmem>>, vector<1x512x128xbf16>
    %115 = vector.shape_cast %114 : vector<1x512x128xbf16> to vector<512x128xbf16>
    %cst_36 = arith.constant dense<0.000000e+00> : vector<8x128xf32>
    %116 = tpu.matmul %113, %115, %cst_36 {dimension_numbers = #tpu.dot_dimension_numbers<[1], [0], [0], [1], [0, 0, 1, 1], [], []>} : vector<8x512xbf16>, vector<512x128xbf16>, vector<8x128xf32> -> vector<8x128xf32>
    %117 = vector.broadcast %11 : vector<1x128xf32> to vector<8x128xf32>
    %118 = arith.addf %116, %117 : vector<8x128xf32>
    %119 = arith.addf %82, %118 : vector<8x128xf32>
    %c0_37 = arith.constant 0 : index
    %c0_38 = arith.constant 0 : index
    %120 = vector.load %arg11[%c0_37, %c0_38] : memref<8x128xf32, #tpu.memory_space<vmem>>, vector<8x128xf32>
    tpu.vector_store %arg11[%c0_37, %c0_38], %119 {strides = array<i32>} : memref<8x128xf32, #tpu.memory_space<vmem>>, vector<8x128xf32>,
    %c1_i32 = arith.constant 1 : i32
    %121 = arith.cmpi eq, %arg1, %c1_i32 : i32
    %122 = arith.extui %121 : i1 to i32
    %c0_i32_39 = arith.constant 0 : i32
    %123 = arith.cmpi ne, %122, %c0_i32_39 : i32
    scf.if %123 {
      %c0_40 = arith.constant 0 : index
      %c0_41 = arith.constant 0 : index
      %124 = vector.load %arg8[%c0_40, %c0_41] : memref<1x128xf32, #tpu.memory_space<vmem>>, vector<1x128xf32>
      %c0_42 = arith.constant 0 : index
      %c0_43 = arith.constant 0 : index
      %125 = vector.load %arg9[%c0_42, %c0_43] : memref<1x128xf32, #tpu.memory_space<vmem>>, vector<1x128xf32>
      %cst_44 = arith.constant dense<0.000000e+00> : vector<8xf32>
      %126 = vector.multi_reduction <add>, %119, %cst_44 [1] : vector<8x128xf32> to vector<8xf32>
      %127 = vector.shape_cast %126 : vector<8xf32> to vector<8x1xf32>
      %cst_45 = arith.constant 1.280000e+02 : f32
      %128 = vector.broadcast %cst_45 : f32 to vector<8x1xf32>
      %129 = arith.divf %127, %128 : vector<8x1xf32>
      %130 = vector.broadcast %129 : vector<8x1xf32> to vector<8x128xf32>
      %131 = arith.subf %119, %130 : vector<8x128xf32>
      %132 = arith.mulf %131, %131 : vector<8x128xf32>
      %cst_46 = arith.constant dense<0.000000e+00> : vector<8xf32>
      %133 = vector.multi_reduction <add>, %132, %cst_46 [1] : vector<8x128xf32> to vector<8xf32>
      %134 = vector.shape_cast %133 : vector<8xf32> to vector<8x1xf32>
      %cst_47 = arith.constant 1.280000e+02 : f32
      %135 = vector.broadcast %cst_47 : f32 to vector<8x1xf32>
      %136 = arith.divf %134, %135 : vector<8x1xf32>
      %137 = vector.broadcast %129 : vector<8x1xf32> to vector<8x128xf32>
      %138 = arith.subf %119, %137 : vector<8x128xf32>
      %cst_48 = arith.constant 9.99999974E-6 : f32
      %139 = vector.broadcast %cst_48 : f32 to vector<8x1xf32>
      %140 = arith.addf %136, %139 : vector<8x1xf32>
      %141 = math.rsqrt %140 : vector<8x1xf32>
      %142 = vector.broadcast %141 : vector<8x1xf32> to vector<8x128xf32>
      %143 = arith.mulf %138, %142 : vector<8x128xf32>
      %144 = vector.broadcast %124 : vector<1x128xf32> to vector<8x128xf32>
      %145 = arith.mulf %143, %144 : vector<8x128xf32>
      %146 = vector.broadcast %125 : vector<1x128xf32> to vector<8x128xf32>
      %147 = arith.addf %145, %146 : vector<8x128xf32>
      %c0_49 = arith.constant 0 : index
      %c0_50 = arith.constant 0 : index
      %148 = vector.load %arg10[%c0_49, %c0_50] : memref<8x128xf32, #tpu.memory_space<vmem>>, vector<8x128xf32>
      tpu.vector_store %arg10[%c0_49, %c0_50], %147 {strides = array<i32>} : memref<8x128xf32, #tpu.memory_space<vmem>>, vector<8x128xf32>,
    } else {
    }
    return
  }
  func.func @transform_0(%arg0: i32, %arg1: i32) -> (i32, i32) {
    %c0_i32 = arith.constant 0 : i32
    %c0_i32_0 = arith.constant 0 : i32
    return %arg0, %c0_i32 : i32, i32
  }
  func.func @transform_1(%arg0: i32, %arg1: i32) -> (i32, i32, i32) {
    %c0_i32 = arith.constant 0 : i32
    %c0_i32_0 = arith.constant 0 : i32
    %c0_i32_1 = arith.constant 0 : i32
    return %arg1, %c0_i32, %c0_i32_0 : i32, i32, i32
  }
  func.func @transform_2(%arg0: i32, %arg1: i32) -> (i32, i32, i32) {
    %c0_i32 = arith.constant 0 : i32
    %c0_i32_0 = arith.constant 0 : i32
    %c0_i32_1 = arith.constant 0 : i32
    return %arg1, %c0_i32, %c0_i32_0 : i32, i32, i32
  }
  func.func @transform_3(%arg0: i32, %arg1: i32) -> (i32, i32, i32) {
    %c0_i32 = arith.constant 0 : i32
    %c0_i32_0 = arith.constant 0 : i32
    %c0_i32_1 = arith.constant 0 : i32
    return %arg1, %c0_i32, %c0_i32_0 : i32, i32, i32
  }
  func.func @transform_4(%arg0: i32, %arg1: i32) -> (i32, i32, i32) {
    %c0_i32 = arith.constant 0 : i32
    %c0_i32_0 = arith.constant 0 : i32
    %c0_i32_1 = arith.constant 0 : i32
    return %arg1, %c0_i32, %c0_i32_0 : i32, i32, i32
  }
  func.func @transform_5(%arg0: i32, %arg1: i32) -> (i32, i32, i32) {
    %c0_i32 = arith.constant 0 : i32
    %c0_i32_0 = arith.constant 0 : i32
    %c0_i32_1 = arith.constant 0 : i32
    return %arg1, %c0_i32, %c0_i32_0 : i32, i32, i32
  }
  func.func @transform_6(%arg0: i32, %arg1: i32) -> (i32, i32) {
    %c0_i32 = arith.constant 0 : i32
    %c0_i32_0 = arith.constant 0 : i32
    %c0_i32_1 = arith.constant 0 : i32
    return %c0_i32, %c0_i32_0 : i32, i32
  }
  func.func @transform_7(%arg0: i32, %arg1: i32) -> (i32, i32) {
    %c0_i32 = arith.constant 0 : i32
    %c0_i32_0 = arith.constant 0 : i32
    %c0_i32_1 = arith.constant 0 : i32
    return %c0_i32, %c0_i32_0 : i32, i32
  }
  func.func @transform_8(%arg0: i32, %arg1: i32) -> (i32, i32) {
    %c0_i32 = arith.constant 0 : i32
    %c0_i32_0 = arith.constant 0 : i32
    return %arg0, %c0_i32 : i32, i32
  }
}

</mosaic_0001>

<bundles_post_ra>
// kernel: tpu_custom_call.1
= control target key start
LH: loop header
LB: loop body
LE: loop exit
PB: predicated region body
PF: predicated region fallthrough
CT: control target
= control target key end

     0   :  { %s4683_s0 = inlined_call_operand.hbm [shape: f32[16,128], index: 0, kind: input, shape index: {}]   ;;  %s4684_s1 = inlined_call_operand.hbm [shape: f32[2,8,512], index: 1, kind: input, shape index: {}]   ;;  %s4685_s2 = inlined_call_operand.hbm [shape: bf16[2,128,384], index: 2, kind: input, shape index: {}]   ;;  %s4686_s3 = inlined_call_operand.hbm [shape: bf16[2,128,128], index: 3, kind: input, shape index: {}]   ;;  %s4687_s4 = inlined_call_operand.hbm [shape: bf16[2,128,512], index: 4, kind: input, shape index: {}]   ;;  %s4688_s5 = inlined_call_operand.hbm [shape: bf16[2,512,128], index: 5, kind: input, shape index: {}]   ;;  %s4689_s6 = inlined_call_operand.vmem [shape: f32[1,128], index: 6, kind: input, shape index: {}]   ;;  %s4690_s7 = inlined_call_operand.vmem [shape: f32[1,128], index: 7, kind: input, shape index: {}]   ;;  %s4691_s8 = inlined_call_operand.hbm [shape: f32[16,128], index: 8, kind: output, shape index: {}]  }
   0x1   :  { %4711 = sst [smem:[#allocation31_spill]] %s4684_s1 }
   0x2   :  { %4712 = sst [smem:[#allocation32_spill]] %s4686_s3 }
   0x3   :  { %4713 = sst [smem:[#allocation33_spill]] %s4689_s6 }
   0x4   :  { %4714 = sst [smem:[#allocation34_spill]] %s4690_s7 }
   0x5   :  { %4715 = sst [smem:[#allocation35_spill]] %s4691_s8 }
   0x6   :  { %13 = vsyncpa [#allocation4], 0 }
   0x7   :  { %15 = vsyncpa [#allocation4 + $0x1], 0 }
   0x8   :  { %16 = vsyncpa [#allocation7], 0 }
   0x9   :  { %18 = vsyncpa [#allocation7 + $0x1], 0 }
   0xa   :  { %19 = vsyncpa [#allocation10], 0 }
   0xb   :  { %21 = vsyncpa [#allocation10 + $0x1], 0 }
   0xc   :  { %22 = vsyncpa [#allocation13], 0 }
   0xd   :  { %24 = vsyncpa [#allocation13 + $0x1], 0 }
   0xe   :  { %25 = vsyncpa [#allocation5], 0 }
   0xf   :  { %27 = vsyncpa [#allocation5 + $0x1], 0  ;;  %s3880_s27 = smov 0   ;;  %s3882_s28 = smov 0  }
  0x10   :  { %s3884_s29 = smov 0   ;;  %s3886_s30 = smov 0  }
  0x11   :  { %s3888_s9 = smov 0   ;;  %s3890_s10 = smov 0  }
  0x12   :  { %s3892_s11 = smov 0   ;;  %s3894_s12 = smov 0  }
  0x13   :  { %s3896_s13 = smov 0   ;;  %s3898_s14 = smov 0  }
  0x14   :  { %s3900_s15 = smov 0  }
  0x15 LB: > { %4716 = sst [smem:[#allocation20_spill]] %s3780_s29  ;;  %p4695_p0 = scmp.eq.s32.totalorder %s3812_s15, 0  ;;  %s3812_s15 = sphi %s3900_s15, %s33_s15   ;;  %s3808_s14 = sphi %s3898_s14, %s4773_s14   ;;  %s3804_s13 = sphi %s3896_s13, %s4772_s13   ;;  %s3800_s12 = sphi %s3894_s12, %s4764_s12   ;;  %s3796_s11 = sphi %s3892_s11, %s4771_s11   ;;  %s3792_s10 = sphi %s3890_s10, %s4763_s10   ;;  %s3788_s9 = sphi %s3888_s9, %s4770_s9   ;;  %s3784_s30 = sphi %s3886_s30, %s4769_s30   ;;  %s3780_s29 = sphi %s3884_s29, %s4761_s29   ;;  %s3776_s28 = sphi %s3882_s28, %s4768_s28   ;;  %s3772_s27 = sphi %s3880_s27, %s4767_s27  }
  0x16   : > { %4717 = sst [smem:[#allocation21_spill]] %s3792_s10  ;;  %p85_p1 = scmp.ne.s32.totalorder %s3780_s29, %s3776_s28 }
  0x17   : > { %4718 = sst [smem:[#allocation22_spill]] %s3796_s11  ;;  %p4693_p3 = scmp.lt.s32.totalorder %s3812_s15, 4 }
  0x18   : > { %4719 = sst [smem:[#allocation23_spill]] %s3800_s12  ;;  %p87_p4 = por %p85_p1, %p4695_p0 }
  0x19   : > { %4720 = sst [smem:[#allocation24_spill]] %s3808_s14  ;;  %s4694_s17 = sand.u32 1, %s3812_s15  }
  0x1a   : > { %s3946_s18 = sand.u32 1, %s3780_s29   ;;  %s3040_s20 = sshll.u32 %s3804_s13, 9 }
  0x1b   : > { %s2906_s19 = sshll.u32 %s3946_s18, 5  ;;  %s4721_s1 = sld [smem:[#allocation31_spill]] }
  0x1c   : > { %s315_s24 = scalar_lea.vmem [#allocation6], %s2906_s19  ;;  %p3957_p5 = pnand %p4693_p3, %p87_p4 }
  0x1d   : > { %s323_s25 = sshll.u32 %s315_s24, 4  ;;  %s3966_s16 = scalar_lea.sflag [#allocation7], %s4694_s17  ;;  %s3961_s25 = int_to_ptr.vmem [resolvable:$true] %s323_s25 }
  0x1e   : > { %s4722_s26 = scalar_select %p3957_p5, 1, 0 }
  0x1f   : > { %p3972_p8 = pneg %p3957_p5 }
  0x21   : > { %s3953_s23 = scalar_lea.hbm %s4721_s1, %s3040_s20  ;;  %s3503_s24 = scalar_lea.hbm %s4721_s1, 1024 }
  0x22   : > { %s3498_s20 = scalar_lea.hbm %s3953_s23, 512  ;;  %p3504_p11 = scmp.lt.u32.totalorder %s3953_s23, %s4721_s1 }
  0x23   : > { %p3499_p7 = scmp.ne.s32.totalorder %s3953_s23, %s3498_s20  ;;  %p3505_p12 = scmp.lt.u32.totalorder %s3503_s24, %s3498_s20 }
  0x24   : > { %p3507_p1 = scmp.lt.u32.totalorder %s3498_s20, %s3953_s23 }
  0x25   : > { %p3501_p9 = pnand %p3972_p8, %p3499_p7  ;;  %p3506_p13 = por %p3505_p12, %p3504_p11 }
  0x27   : > { %p3502_p10 = pneg %p3501_p9  ;;  %p3508_p4 = por %p3507_p1, %p3506_p13 }
  0x29   : > { %p3509_p3 = pnand %p3508_p4, %p3502_p10 }
  0x2b   : > { %3512 = shalt.err (!%p3509_p3)
}
  0x2c   : > { %s3513_s17 = scalar_lea.vmem %s3961_s25, 512  ;;  %s3814_s19 = smov [#allocation6]  }
  0x2d   : > { %p3514_p7 = scmp.ne.s32.totalorder %s3961_s25, %s3513_s17  ;;  %s3518_s22 = sshll.u32 %s3814_s19, 4  ;;  %s3519_s22 = int_to_ptr.vmem [resolvable:$false] %s3518_s22 }
  0x2e   : > { %s3520_s8 = scalar_lea.vmem %s3519_s22, 1024  ;;  %p3521_p0 = scmp.lt.s32.totalorder %s3961_s25, %s3519_s22 }
  0x2f   : > { %p3516_p9 = pnand %p3514_p7, %p3972_p8  ;;  %p3522_p6 = scmp.lt.s32.totalorder %s3520_s8, %s3513_s17 }
  0x31   : > { %p3517_p2 = pneg %p3516_p9  ;;  %p3523_p11 = por %p3522_p6, %p3521_p0 }
  0x33   : > { %p3524_p12 = pnand %p3523_p11, %p3517_p2 }
  0x35   : > { %3527 = shalt.err (!%p3524_p12)
}
  0x36   : > { %3233 = dma.hbm_to_vmem [thread:$0]  (!%p3957_p5), %s3953_s23, 512, %s3961_s25, %s3966_s16  }
  0x37   : > { %p412_p3 = scmp.lt.s32.totalorder %s3812_s15, 5  ;;  %s2910_s12 = sshll.u32 %s3946_s18, 6 }
  0x38   : > { %s3041_s20 = sshll.u32 %s3804_s13, 10  ;;  %p4724_p10 = scmp.ge.s32.totalorder %s3812_s15, 1 }
  0x39   : > { %s4726_s3 = sld [smem:[#allocation32_spill]]  ;;  %s355_s8 = scalar_lea.vmem [#allocation9], %s2910_s12 }
  0x3a   : > { %p4001_p13 = pnand %p4724_p10, %p412_p3  ;;  %s362_s1 = sshll.u32 %s355_s8, 4  ;;  %s4010_s1 = int_to_ptr.vmem [resolvable:$true] %s362_s1 }
  0x3b   : > { %s4727_s23 = sand.u32 1, %s3812_s15  }
  0x3c   : > { %s4725_s17 = scalar_select %p4001_p13, 1, 0 }
  0x3d   : > { %s4014_s25 = scalar_lea.sflag [#allocation10], %s4727_s23 }
  0x3f   : > { %s4008_s22 = scalar_lea.hbm %s4726_s3, %s3041_s20  ;;  %s3533_s20 = scalar_lea.hbm %s4726_s3, 2048 }
  0x40   : > { %s3528_s7 = scalar_lea.hbm %s4008_s22, 1024  ;;  %p3534_p1 = scmp.lt.u32.totalorder %s4008_s22, %s4726_s3 }
  0x41   : > { %p3529_p0 = scmp.ne.s32.totalorder %s4008_s22, %s3528_s7  ;;  %p3535_p4 = scmp.lt.u32.totalorder %s3533_s20, %s3528_s7 }
  0x42   : > { %p3537_p9 = scmp.lt.u32.totalorder %s3528_s7, %s4008_s22 }
  0x43   : > { %p3531_p2 = pnand %p3529_p0, %p3972_p8  ;;  %p3536_p7 = por %p3535_p4, %p3534_p1 }
  0x45   : > { %p3532_p6 = pneg %p3531_p2  ;;  %p3538_p11 = por %p3537_p9, %p3536_p7 }
  0x47   : > { %p3539_p12 = pnand %p3538_p11, %p3532_p6 }
  0x49   : > { %3542 = shalt.err (!%p3539_p12)
}
  0x4a   : > { %s3543_s12 = scalar_lea.vmem %s4010_s1, 1024  ;;  %s3815_s6 = smov [#allocation9]  }
  0x4b   : > { %p3544_p3 = scmp.ne.s32.totalorder %s4010_s1, %s3543_s12  ;;  %s3548_s8 = sshll.u32 %s3815_s6, 4  ;;  %s3549_s8 = int_to_ptr.vmem [resolvable:$false] %s3548_s8 }
  0x4c   : > { %s3550_s11 = scalar_lea.vmem %s3549_s8, 2048  ;;  %p3551_p2 = scmp.lt.s32.totalorder %s4010_s1, %s3549_s8 }
  0x4d   : > { %p3546_p10 = pnand %p3544_p3, %p3972_p8  ;;  %p3552_p13 = scmp.lt.s32.totalorder %s3550_s11, %s3543_s12 }
  0x4f   : > { %p3547_p0 = pneg %p3546_p10  ;;  %p3553_p1 = por %p3552_p13, %p3551_p2 }
  0x51   : > { %p3554_p4 = pnand %p3553_p1, %p3547_p0 }
  0x53   : > { %3557 = shalt.err (!%p3554_p4)
}
  0x54   : > { %s4696_s7 = smov 64   ;;  %s4697_s23 = smov 4  }
  0x55   : > { %3239 = dma.hbm_to_vmem [thread:$0]  (!%p3957_p5), %s4008_s22, 1024, %s4010_s1, %s4014_s25, %s4696_s7, %s4696_s7, %s4697_s23  }
  0x56   : > { %s4042_s24 = sadd.s32 4294967295, %s3812_s15   ;;  %s2901_s20 = sadd.s32 4294967294, %s3812_s15  }
  0x57   : > { %s42_s19 = sadd.s32 1, %s3804_s13  ;;  %s45_s12 = sadd.s32 1, %s3808_s14 }
  0x58   : > { %p43_p13 = scmp.ge.s32.totalorder %s42_s19, 2  ;;  %s52_s6 = sadd.s32 1, %s3792_s10 }
  0x59   : > { %p59_p6 = scmp.ne.s32.totalorder %s3792_s10, %s3788_s9  ;;  %p65_p7 = scmp.ne.s32.totalorder %s3788_s9, %s3784_s30 }
  0x5a   : > { %s4775_s19 = smov (%p43_p13, %s42_s19), 0  ;;  %s4777_s12 = smov (!%p43_p13, %s45_s12), %s3808_s14 }
  0x5b   : > { %4728 = sst [smem:[#allocation25_spill]] %s4775_s19  ;;  %p4729_p9 = scmp.eq.s32.totalorder %s3812_s15, 0 }
  0x5c   : > { %p66_p12 = scmp.eq.s32.totalorder %s4042_s24, 0  ;;  %p47_p3 = scmp.ge.s32.totalorder %s4777_s12, 2 }
  0x5d   : > { %p4060_p11 = por %p4729_p9, %p59_p6  ;;  %s75_s22 = ssub.s32 %s3804_s13, %s4775_s19 }
  0x5e   : > { %p4070_p10 = por %p66_p12, %p65_p7  ;;  %p76_p0 = scmp.eq.s32.totalorder %s75_s22, 0 }
  0x5f   : > { %s4779_s12 = smov (%p47_p3, %s4777_s12), 0  ;;  %s4733_s11 = sadd.s32 1, %s3780_s29 }
  0x60   : > { %s4731_s8 = scalar_select %p4070_p10, 1, 0 }
  0x61   : > { %4732 = sst [smem:[#allocation26_spill]] %s4779_s12  ;;  %s49_s23 = ssub.s32 %s3808_s14, %s4779_s12 }
  0x62   : > { %s4079_s7 = scalar_select %p76_p0, %s3780_s29, %s4733_s11  }
  0x63   : > { %p4735_p2 = scmp.ne.s32.totalorder %s3776_s28, %s3772_s27  ;;  %p50_p4 = scmp.eq.s32.totalorder %s49_s23, 0 }
  0x64   : > { %4734 = sst [smem:[#allocation27_spill]] %s4079_s7  ;;  %p261_p13 = scmp.eq.s32.totalorder %s4042_s24, 3 }
  0x65   : > { %p4086_p1 = por %p4735_p2, %p66_p12  ;;  %p267_p9 = scmp.eq.s32.totalorder %s2901_s20, 3 }
  0x66   : > { %s293_s22 = sand.u32 1, %s3792_s10   ;;  %p4098_p3 = por %p261_p13, %p59_p6 }
  0x67   : > { %s4736_s3 = scalar_select %p4086_p1, 1, 0 }
  0x68   : > { %s4093_s19 = scalar_select %p50_p4, %s3792_s10, %s52_s6  }
  0x69   : > { %4737 = sst [smem:[#allocation28_spill]] %s4736_s3  ;;  %p4105_p0 = por %p267_p9, %p65_p7 }
  0x6a   : > { %4738 = sst [smem:[#allocation29_spill]] %s4093_s19  ;;  %s2904_s12 = sshll.u32 %s293_s22, 3 }
  0x6b   : > { %s4739_s11 = scalar_select %p4098_p3, 1, 0 }
  0x6c   : > { %s4740_s27 = scalar_select %p4105_p0, 1, 0 }
  0x6d   : > { %s2905_s7 = sshll.u32 %s3808_s14, 7  ;;  %s297_s20 = scalar_lea.vmem [#allocation3], %s2904_s12 }
  0x6e   : > { %4741 = sst [smem:[#allocation30_spill]] %s4740_s27  ;;  %s4113_s23 = scalar_lea.hbm %s4683_s0, %s2905_s7 }
  0x6f   : > { %s304_s6 = sshll.u32 %s297_s20, 4  ;;  %p4742_p6 = scmp.lt.s32.totalorder %s3812_s15, 4  ;;  %s4115_s6 = int_to_ptr.vmem [resolvable:$true] %s304_s6 }
  0x70   : > { %s3210_s14 = smul.u32 192, %s3946_s18  ;;  %s294_s29 = scalar_lea.sflag [#allocation4], %s293_s22 }
  0x71   : > { %p4121_p7 = pnand %p4742_p6, %p4060_p11  ;;  %s3211_s3 = smul.u32 3072, %s3804_s13 }
  0x72   : > { %s3558_s7 = scalar_lea.hbm %s4113_s23, 128  ;;  %s3563_s20 = scalar_lea.hbm %s4683_s0, 256 }
  0x73   : > { %p3559_p12 = scmp.ne.s32.totalorder %s4113_s23, %s3558_s7  ;;  %p3560_p2 = pneg %p4121_p7 }
  0x74   : > { %p3564_p11 = scmp.lt.u32.totalorder %s4113_s23, %s4683_s0  ;;  %p3565_p9 = scmp.lt.u32.totalorder %s3563_s20, %s3558_s7 }
  0x75   : > { %p3561_p4 = pnand %p3560_p2, %p3559_p12  ;;  %p3567_p0 = scmp.lt.u32.totalorder %s3558_s7, %s4113_s23 }
  0x76   : > { %p3566_p6 = por %p3565_p9, %p3564_p11 }
  0x77   : > { %p3562_p13 = pneg %p3561_p4 }
  0x78   : > { %p3568_p3 = por %p3567_p0, %p3566_p6 }
  0x7a   : > { %p3569_p1 = pnand %p3568_p3, %p3562_p13 }
  0x7c   : > { %3572 = shalt.err (!%p3569_p1)
}
  0x7d   : > { %s3573_s22 = scalar_lea.vmem %s4115_s6, 128  ;;  %s3818_s12 = smov [#allocation3]  }
  0x7e   : > { %p3574_p12 = scmp.ne.s32.totalorder %s4115_s6, %s3573_s22  ;;  %s3578_s1 = sshll.u32 %s3818_s12, 4  ;;  %s3579_s1 = int_to_ptr.vmem [resolvable:$false] %s3578_s1 }
  0x7f   : > { %s3580_s10 = scalar_lea.vmem %s3579_s1, 256  ;;  %p3581_p5 = scmp.lt.s32.totalorder %s4115_s6, %s3579_s1 }
  0x80   : > { %p3576_p4 = pnand %p3574_p12, %p3560_p2  ;;  %p3582_p11 = scmp.lt.s32.totalorder %s3580_s10, %s3573_s22 }
  0x82   : > { %p3577_p10 = pneg %p3576_p4  ;;  %p3583_p9 = por %p3582_p11, %p3581_p5 }
  0x84   : > { %p3584_p0 = pnand %p3583_p9, %p3577_p10 }
  0x86   : > { %3587 = shalt.err (!%p3584_p0)
}
  0x87   : > { %3230 = dma.hbm_to_vmem [thread:$0]  (!%p4121_p7), %s4113_s23, 128, %s4115_s6, %s294_s29  }
  0x88   : > { %s4157_s20 = scalar_lea.hbm %s4685_s2, %s3211_s3  ;;  %s334_s22 = scalar_lea.vmem [#allocation8], %s3210_s14 }
  0x89   : > { %s341_s19 = sshll.u32 %s334_s22, 4  ;;  %s2913_s12 = sshll.u32 %s3946_s18, 8  ;;  %s4161_s19 = int_to_ptr.vmem [resolvable:$true] %s341_s19 }
  0x8a   : > { %s3588_s1 = scalar_lea.hbm %s4157_s20, 3072  ;;  %s3593_s3 = scalar_lea.hbm %s4685_s2, 6144 }
  0x8b   : > { %p3589_p5 = scmp.ne.s32.totalorder %s4157_s20, %s3588_s1  ;;  %p3594_p3 = scmp.lt.u32.totalorder %s4157_s20, %s4685_s2 }
  0x8c   : > { %p3595_p7 = scmp.lt.u32.totalorder %s3593_s3, %s3588_s1  ;;  %p3597_p13 = scmp.lt.u32.totalorder %s3588_s1, %s4157_s20 }
  0x8d   : > { %p3591_p10 = pnand %p3589_p5, %p3972_p8 }
  0x8e   : > { %p3596_p2 = por %p3595_p7, %p3594_p3 }
  0x8f   : > { %p3592_p1 = pneg %p3591_p10 }
  0x90   : > { %p3598_p6 = por %p3597_p13, %p3596_p2 }
  0x92   : > { %p3599_p12 = pnand %p3598_p6, %p3592_p1 }
  0x94   : > { %3602 = shalt.err (!%p3599_p12)
}
  0x95   : > { %s3603_s14 = scalar_lea.vmem %s4161_s19, 3072  ;;  %s3819_s27 = smov [#allocation8]  }
  0x96   : > { %p3604_p4 = scmp.ne.s32.totalorder %s4161_s19, %s3603_s14  ;;  %s3608_s7 = sshll.u32 %s3819_s27, 4  ;;  %s3609_s7 = int_to_ptr.vmem [resolvable:$false] %s3608_s7 }
  0x97   : > { %s3610_s22 = scalar_lea.vmem %s3609_s7, 6144  ;;  %p3611_p0 = scmp.lt.s32.totalorder %s4161_s19, %s3609_s7 }
  0x98   : > { %p3606_p11 = pnand %p3604_p4, %p3972_p8  ;;  %p3612_p5 = scmp.lt.s32.totalorder %s3610_s22, %s3603_s14 }
  0x9a   : > { %p3607_p9 = pneg %p3606_p11  ;;  %p3613_p10 = por %p3612_p5, %p3611_p0 }
  0x9c   : > { %p3614_p3 = pnand %p3613_p10, %p3607_p9 }
  0x9e   : > { %3617 = shalt.err (!%p3614_p3)
}
  0x9f   : > { %s3820_s1 = smov 192   ;;  %s3821_s23 = smov 12  }
  0xa0   : > { %p4744_p1 = scmp.ne.s32.totalorder %s4722_s26, 0  ;;  %s3042_s6 = sshll.u32 %s3804_s13, 12 }
  0xa1   : > { %s4192_s10 = scalar_lea.hbm %s4687_s4, %s3042_s6  ;;  %s376_s14 = scalar_lea.vmem [#allocation11], %s2913_s12 }
  0xa2   : > { %3236 = dma.hbm_to_vmem [thread:$0]  (!%p4744_p1), %s4157_s20, 3072, %s4161_s19, %s3966_s16, %s3820_s1, %s3820_s1, %s3821_s23  }
  0xa3   : > { %s383_s27 = sshll.u32 %s376_s14, 4  ;;  %s3618_s7 = scalar_lea.hbm %s4192_s10, 4096  ;;  %s4196_s27 = int_to_ptr.vmem [resolvable:$true] %s383_s27 }
  0xa4   : > { %p3619_p7 = scmp.ne.s32.totalorder %s4192_s10, %s3618_s7  ;;  %s3623_s19 = scalar_lea.hbm %s4687_s4, 8192 }
  0xa5   : > { %p3624_p6 = scmp.lt.u32.totalorder %s4192_s10, %s4687_s4  ;;  %p3625_p12 = scmp.lt.u32.totalorder %s3623_s19, %s3618_s7 }
  0xa6   : > { %p3621_p2 = pnand %p3619_p7, %p3972_p8  ;;  %p3627_p11 = scmp.lt.u32.totalorder %s3618_s7, %s4192_s10 }
  0xa7   : > { %p3626_p4 = por %p3625_p12, %p3624_p6 }
  0xa8   : > { %p3622_p13 = pneg %p3621_p2 }
  0xa9   : > { %p3628_p9 = por %p3627_p11, %p3626_p4 }
  0xab   : > { %p3629_p0 = pnand %p3628_p9, %p3622_p13 }
  0xad   : > { %3632 = shalt.err (!%p3629_p0)
}
  0xae   : > { %s3633_s23 = scalar_lea.vmem %s4196_s27, 4096  ;;  %s3822_s3 = smov [#allocation11]  }
  0xaf   : > { %p3634_p5 = scmp.ne.s32.totalorder %s4196_s27, %s3633_s23  ;;  %s3638_s29 = sshll.u32 %s3822_s3, 4  ;;  %s3639_s29 = int_to_ptr.vmem [resolvable:$false] %s3638_s29 }
  0xb0   : > { %s3640_s14 = scalar_lea.vmem %s3639_s29, 8192  ;;  %p3641_p7 = scmp.lt.s32.totalorder %s4196_s27, %s3639_s29 }
  0xb1   : > { %p3636_p10 = pnand %p3634_p5, %p3972_p8  ;;  %p3642_p2 = scmp.lt.s32.totalorder %s3640_s14, %s3633_s23 }
  0xb3   : > { %p3637_p3 = pneg %p3636_p10  ;;  %p3643_p6 = por %p3642_p2, %p3641_p7 }
  0xb5   : > { %p3644_p12 = pnand %p3643_p6, %p3637_p3 }
  0xb7   : > { %3647 = shalt.err (!%p3644_p12)
}
  0xb8   : > { %s3823_s7 = smov 256   ;;  %s3824_s16 = smov 16  }
  0xb9   : > { %3242 = dma.hbm_to_vmem [thread:$0]  (!%p4744_p1), %s4192_s10, 4096, %s4196_s27, %s4014_s25, %s3823_s7, %s3823_s7, %s3824_s16  }
  0xba   : > { %s4225_s22 = scalar_lea.hbm %s4688_s5, %s3042_s6  ;;  %s397_s1 = scalar_lea.vmem [#allocation12], %s2913_s12 }
  0xbb   : > { %s404_s23 = sshll.u32 %s397_s1, 4  ;;  %s394_s3 = scalar_lea.sflag [#allocation13], %s3946_s18  ;;  %s4229_s23 = int_to_ptr.vmem [resolvable:$true] %s404_s23 }
  0xbc   : > { %s3648_s29 = scalar_lea.hbm %s4225_s22, 4096  ;;  %s3653_s6 = scalar_lea.hbm %s4688_s5, 8192 }
  0xbd   : > { %p3649_p13 = scmp.ne.s32.totalorder %s4225_s22, %s3648_s29  ;;  %p3654_p9 = scmp.lt.u32.totalorder %s4225_s22, %s4688_s5 }
  0xbe   : > { %p3655_p0 = scmp.lt.u32.totalorder %s3653_s6, %s3648_s29  ;;  %p3657_p10 = scmp.lt.u32.totalorder %s3648_s29, %s4225_s22 }
  0xbf   : > { %p3651_p4 = pnand %p3649_p13, %p3972_p8 }
  0xc0   : > { %p3656_p5 = por %p3655_p0, %p3654_p9 }
  0xc1   : > { %p3652_p11 = pneg %p3651_p4 }
  0xc2   : > { %p3658_p3 = por %p3657_p10, %p3656_p5 }
  0xc4   : > { %p3659_p7 = pnand %p3658_p3, %p3652_p11 }
  0xc6   : > { %3662 = shalt.err (!%p3659_p7)
}
  0xc7   : > { %s3663_s12 = scalar_lea.vmem %s4229_s23, 4096  ;;  %s3825_s7 = smov [#allocation12]  }
  0xc8   : > { %p3664_p2 = scmp.ne.s32.totalorder %s4229_s23, %s3663_s12  ;;  %s3668_s16 = sshll.u32 %s3825_s7, 4  ;;  %s3669_s16 = int_to_ptr.vmem [resolvable:$false] %s3668_s16 }
  0xc9   : > { %s3670_s20 = scalar_lea.vmem %s3669_s16, 8192  ;;  %p3671_p13 = scmp.lt.s32.totalorder %s4229_s23, %s3669_s16 }
  0xca   : > { %p3666_p6 = pnand %p3664_p2, %p3972_p8  ;;  %p3672_p4 = scmp.lt.s32.totalorder %s3670_s20, %s3663_s12 }
  0xcc   : > { %p3667_p12 = pneg %p3666_p6  ;;  %p3673_p9 = por %p3672_p4, %p3671_p13 }
  0xce   : > { %p3674_p0 = pnand %p3673_p9, %p3667_p12 }
  0xd0   : > { %3677 = shalt.err (!%p3674_p0)
}
  0xd1   : > { %s4745_s19 = smov 4   ;;  %s4746_s1 = smov 64  }
  0xd2   : > { %3245 = dma.hbm_to_vmem [thread:$0]  (!%p4744_p1), %s4225_s22, 4096, %s4229_s23, %s394_s3, %s4746_s1, %s4746_s1, %s4745_s19  }
  0xd3   : > { %p4747_p8 = scmp.ne.s32.totalorder %s4725_s17, 0 }
  0xd4   : > { %s4261_s21 = sand.u32 (!%p4747_p8), 1, %s3788_s9   ;;  %p4748_p11 = scmp.ne.s32.totalorder (!%p4747_p8), %s4731_s8, 0 }
  0xd5   : > { %416 = sbr.rel (%p4747_p8) target bundleno = 3032 (0xbd8), region = 52  ;;  %s2920_s29 = sshll.u32 (!%p4747_p8), %s4261_s21, 3 }
  0xd6   : > { %s419_s25 = scalar_lea.sflag (!%p4747_p8), [#allocation4], %s4261_s21  ;;  %s422_s26 = scalar_lea.vmem (!%p4747_p8), [#allocation3], %s2920_s29 }
  0xdc   : > { %3751 = dma.done.wait (%p4748_p11), %s419_s25, 128  }
  0xdd   : > { %3753 = vsyncadd (%p4748_p11), %s419_s25, 4294967168  ;;  %s4749_s18 = sld [smem:[#allocation28_spill]]  ;;  %s427_s22 = sand.u32 1, %s4042_s24  }
  0xde   : > { %s429_s17 = sand.u32 1, %s3776_s28   ;;  %s428_s3 = scalar_lea.sflag [#allocation7], %s427_s22 }
  0xdf   : > { %s2921_s23 = sshll.u32 %s429_s17, 5 }
  0xe0   : > { %s4271_s10 = scalar_lea.vmem [#allocation6], %s2921_s23 }
  0xe3   : > { %p4750_p1 = scmp.ne.s32.totalorder %s4749_s18, 0 }
  0xe5   : > { %3755 = dma.done.wait (%p4750_p1), %s428_s3, 3584  }
  0xe6   : > { %3757 = vsyncadd (%p4750_p1), %s428_s3, 4294963712  ;;  %s3212_s6 = smul.u32 192, %s429_s17  ;;  %s2922_s27 = sshll.u32 %s429_s17, 6 }
  0xe7   : > { %s446_s8 = scalar_lea.sflag [#allocation10], %s427_s22  ;;  %s4279_s12 = scalar_lea.vmem [#allocation9], %s2922_s27 }
  0xe8   : > { %s4277_s14 = scalar_lea.vmem [#allocation8], %s3212_s6 }
  0xe9   : > { %3759 = dma.done.wait (%p4750_p1), %s446_s8, 5120  }
  0xea   : > { %3761 = vsyncadd (%p4750_p1), %s446_s8, 4294962176  ;;  %s2923_s24 = sshll.u32 %s429_s17, 8  ;;  %s464_s16 = scalar_lea.sflag [#allocation13], %s429_s17 }
  0xeb   : > { %s4285_s7 = scalar_lea.vmem [#allocation11], %s2923_s24  ;;  %s4287_s20 = scalar_lea.vmem [#allocation12], %s2923_s24 }
  0xec   : > { %3763 = dma.done.wait (%p4750_p1), %s464_s16, 4096  }
  0xed   : > { %3765 = vsyncadd (%p4750_p1), %s464_s16, 4294963200  ;;  %s4293_s19 = scalar_lea.vmem [#allocation14], %s2920_s29  ;;  %s4751_s1 = sld [smem:[#allocation22_spill]] }
  0xf3   : > { %p2926_p5 = scmp.ne.s32.totalorder %s4751_s1, 0 }
  0xf4   : > { %v530_v0 = vld [vmem:[%s422_s26] sm:$0xff] (!%p2926_p5) }
  0xf5   : > { %529 = sbr.rel (%p2926_p5) target bundleno = 252 (0xfc), region = 80  ;;  %531 = vst [vmem:[#allocation2] sm:$0xff] (!%p2926_p5), %v530_v0 }
  0xfc PF: > { %v532_v1 = vld [vmem:[#allocation2] sm:$0xff]  ;;  %v3354_v2 = vld [vmem:[%s4277_s14 + $0x4] ss:$12 sps:$4 sm:$0xff]   ;;  %v3826_v4 = vmov 0.0   ;;  %v3362_v9 = vld [vmem:[%s4277_s14 + $0x34] ss:$12 sps:$4 sm:$0xff]   ;;  %v549_v34 = vlaneseq }
  0xfd   : > { %537 = vadd.xlane.f32.xlu0 %v532_v1  ;;  %v3356_v3 = vld [vmem:[%s4277_s14] ss:$12 sps:$4 sm:$0xff]   ;;  %3122 = vmatprep.subr.bf16.mxu1 %v3826_v4  ;;  %v3357_v5 = vld [vmem:[%s4277_s14 + $0x8] ss:$12 sps:$4 sm:$0xff]   ;;  %v3360_v7 = vld [vmem:[%s4277_s14 + $0x18] ss:$12 sps:$4 sm:$0xff]  }
  0xfe   : > { %v3358_v6 = vld [vmem:[%s4277_s14 + $0x1c] ss:$12 sps:$4 sm:$0xff]   ;;  %720 = vmatprep.subr.bf16.mxu0 %v3354_v2  ;;  %v3361_v8 = vld [vmem:[%s4277_s14 + $0x20] ss:$12 sps:$4 sm:$0xff]   ;;  %3123 = vmatpush3.bf16.msra.mxu1 %v3357_v5  ;;  %v3365_v15 = vld [vmem:[%s4277_s14 + $0x38] ss:$12 sps:$4 sm:$0xff]  }
  0xff   : > { %721 = vmatpush1.bf16.msra.mxu0 %v3356_v3  ;;  %3124 = vmatprep.subr.bf16.mxu1 %v3826_v4  ;;  %v3364_v14 = vld [vmem:[%s4277_s14 + $0x30] ss:$12 sps:$4 sm:$0xff]   ;;  %v3366_v16 = vld [vmem:[%s4277_s14 + $0x4c] ss:$12 sps:$4 sm:$0xff]   ;;  %v3368_v17 = vld [vmem:[%s4277_s14 + $0x48] ss:$12 sps:$4 sm:$0xff]  }
 0x100   : > { %722 = vmatprep.subr.bf16.mxu0 %v3358_v6  ;;  %v3369_v18 = vld [vmem:[%s4277_s14 + $0x50] ss:$12 sps:$4 sm:$0xff]   ;;  %v3372_v20 = vld [vmem:[%s4277_s14 + $0x60] ss:$12 sps:$4 sm:$0xff]   ;;  %v3373_v21 = vld [vmem:[%s4277_s14 + $0x68] ss:$12 sps:$4 sm:$0xff]  }
 0x101   : > { %v3370_v19 = vld [vmem:[%s4277_s14 + $0x64] ss:$12 sps:$4 sm:$0xff]   ;;  %v3374_v22 = vld [vmem:[%s4277_s14 + $0x7c] ss:$12 sps:$4 sm:$0xff]   ;;  %v3377_v24 = vld [vmem:[%s4277_s14 + $0x80] ss:$12 sps:$4 sm:$0xff]  }
 0x102   : > { %3125 = vmatpush3.bf16.msra.mxu1 %v3361_v8  ;;  %v3376_v23 = vld [vmem:[%s4277_s14 + $0x78] ss:$12 sps:$4 sm:$0xff]   ;;  %v3378_v25 = vld [vmem:[%s4277_s14 + $0x94] ss:$12 sps:$4 sm:$0xff]   ;;  %v3827_v26 = vmov 0   ;;  %vm3828_vm0 = vmmov 0  }
 0x103   : > { %723 = vmatpush1.bf16.msra.mxu0 %v3360_v7  ;;  %3126 = vmatprep.subr.bf16.mxu1 %v3826_v4  ;;  %v3380_v27 = vld [vmem:[%s4277_s14 + $0x90] ss:$12 sps:$4 sm:$0xff]   ;;  %v3381_v28 = vld [vmem:[%s4277_s14 + $0x98] ss:$12 sps:$4 sm:$0xff]   ;;  %v3384_v30 = vld [vmem:[%s4277_s14 + $0xa8] ss:$12 sps:$4 sm:$0xff]  }
 0x104   : > { %724 = vmatprep.subr.bf16.mxu0 %v3362_v9  ;;  %752 = vmatprep.mubr.bf16.mxu0 %v3827_v26  ;;  %v3382_v29 = vld [vmem:[%s4277_s14 + $0xac] ss:$12 sps:$4 sm:$0xff]   ;;  %v3385_v31 = vld [vmem:[%s4277_s14 + $0xb0] ss:$12 sps:$4 sm:$0xff]   ;;  %v4334_v36 = vshrl.u32 %v549_v34, 7  ;;  %v4338_v38 = vld [vmem:[%s4271_s10] sm:$0xff] }
 0x105   : > { %3138 = vmatprep.mubr.msk.bf16.mxu1 %vm3828_vm0, %v3826_v4  ;;  %s3829_s29 = smov 32   ;;  %s3830_s25 = smov 96   ;;  %v3832_v59 = vmov 1983009808   ;;  %v3833_v61 = vmov 1934713408  }
 0x106   : > { %3127 = vmatpush3.bf16.msra.mxu1 %v3365_v15  ;;  %v551_v37 = vsub.s32 0, %v4334_v36  ;;  %v556_v39 = vsub.s32 1, %v4334_v36  ;;  %s3831_s26 = smov 64   ;;  %v811_v60 = vunpack.c.l.s4 %v3832_v59  ;;  %v828_v62 = vunpack.c.l.s4 %v3833_v61  ;;  %s4752_s18 = sld [smem:[#allocation22_spill]] }
 0x107   : > { %725 = vmatpush1.bf16.msra.mxu0 %v3364_v14  ;;  %3128 = vmatprep.subr.bf16.mxu1 %v3826_v4  ;;  %vm1309_vm1 = vcmask 261120   ;;  %vm1505_vm3 = vcmask 64512   ;;  %vm1549_vm4 = vcmask 1043456   ;;  %vm1888_vm5 = vcmask 523264  }
 0x108   : > { %726 = vmatprep.subr.bf16.mxu0 %v3366_v16  ;;  %v552_v40 = vrot.slane %v4338_v38, %v551_v37  ;;  %v557_v43 = vrot.slane %v4338_v38, %v556_v39  ;;  %v812_v63 = vunpack.c.0.s8 %v811_v60  ;;  %v829_v0 = vunpack.c.0.s8 %v828_v62 }
 0x109   : > { %vm1890_vm6 = vcmask 785408  }
 0x10a   : > { %3129 = vmatpush3.bf16.msra.mxu1 %v3369_v18  ;;  %v4361_v5 = vsub.s32 %v829_v0, %v4334_v36 }
 0x10b   : > { %727 = vmatpush1.bf16.msra.mxu0 %v3368_v17  ;;  %3130 = vmatprep.subr.bf16.mxu1 %v3826_v4 }
 0x10c   : > { %728 = vmatprep.subr.bf16.mxu0 %v3370_v19  ;;  %p3033_p10 = scmp.ne.s32.totalorder %s4752_s18, 1 }
 0x10d   : > { %s4753_s23 = sld [smem:[#allocation33_spill]] (!%p3033_p10)  ;;  %s4754_s6 = sld [smem:[#allocation34_spill]] (!%p3033_p10) }
 0x10e   : > { %3131 = vmatpush3.bf16.msra.mxu1 %v3373_v21 }
 0x10f   : > { %729 = vmatpush1.bf16.msra.mxu0 %v3372_v20  ;;  %3132 = vmatprep.subr.bf16.mxu1 %v3826_v4 }
 0x110   : > { %730 = vmatprep.subr.bf16.mxu0 %v3374_v22 }
 0x112   : > { %3133 = vmatpush3.bf16.msra.mxu1 %v3377_v24 }
 0x113   : > { %731 = vmatpush1.bf16.msra.mxu0 %v3376_v23  ;;  %3134 = vmatprep.subr.bf16.mxu1 %v3826_v4 }
 0x114   : > { %732 = vmatprep.subr.bf16.mxu0 %v3378_v25 }
 0x116   : > { %3135 = vmatpush3.bf16.msra.mxu1 %v3381_v28 }
 0x117   : > { %733 = vmatpush1.bf16.msra.mxu0 %v3380_v27  ;;  %3136 = vmatprep.subr.bf16.mxu1 %v3826_v4 }
 0x118   : > { %734 = vmatprep.subr.bf16.mxu0 %v3382_v29 }
 0x11a   : > { %3137 = vmatpush3.bf16.msra.mxu1 %v3385_v31 }
 0x11b   : > { %735 = vmatpush1.bf16.msra.mxu0 %v3384_v30  ;;  %3142 = vmatprep.subr.bf16.mxu1 %v3826_v4 }
 0x11c   : > { %3166 = vmatprep.subr.bf16.mxu0 %v3826_v4 }
 0x18a   : > { %v538_v10 = vpop.xlane.xlu0 %537 }
 0x18b   : > { %v540_v11 = vmul.f32 0.0078125, %v538_v10 }
 0x18d   : > { %v541_v12 = vsub.f32 %v532_v1, %v540_v11  ;;  %v4358_v1 = vsub.s32 %v812_v63, %v4334_v36 }
 0x18f   : > { %v542_v13 = vmul.f32 %v541_v12, %v541_v12 }
 0x191   : > { %543 = vadd.xlane.f32.xlu0 %v542_v13 }
 0x21e   : > { %v544_v32 = vpop.xlane.xlu0 %543 }
 0x21f   : > { %v545_v33 = vmul.f32 0.0078125, %v544_v32 }
 0x221   : > { %v546_v35 = vadd.f32 1e-05, %v545_v33 }
 0x223   : > { %3474 = vrsqrt.f32 %v546_v35 }
 0x22d   : > { %v3475_v41 = vpop.eup %3474 }
 0x22e   : > { %v548_v42 = vmul.f32 %v3475_v41, %v541_v12 }
 0x230   : > { %v553_v44 = vmul.f32 %v552_v40, %v548_v42 }
 0x232   : > { %v558_v45 = vadd.f32 %v557_v43, %v553_v44 }
 0x234   : > { %v559_v46 = vpack.c.bf16 %v558_v45, %v558_v45 }
 0x236   : > { %753 = vmatmul.mubr.bf16.vlgmr.msra.gmra.mrb[0].mxu0 %v559_v46  ;;  %3139 = vmatmul.mubr.bf16.vlgmr.msra.gmra.mrb[0].mxu1 %v559_v46 }
 0x237   : > { %3144 = vmatprep.mubr.msk.bf16.mxu1 %vm3828_vm0, %v3826_v4  ;;  %3168 = vmatprep.mubr.msk.bf16.mxu0 %vm3828_vm0, %v3826_v4 }
 0x309   : > { %v754_v47 = vpop.f32.mrb[0].mxu0  ;;  %v795_v48 = vpop.f32.mrb[0].mxu1 }
 0x30a   : > { %v756_v49 = vpop.f32.mrb[1].mxu0  ;;  %v3140_v50 = vpop.f32.mrb[1].mxu1  ;;  %v801_v56 = vmul.f32 0.17677669, %v754_v47  ;;  %v4353_v58 = vpack.c.bf16 %v795_v48, %v795_v48 }
 0x30b   : > { %v971_v51 = vpack.c.bf16 %v756_v49, %v756_v49  ;;  %v758_v52 = vpop.f32.mrb[2].mxu0  ;;  %v798_v53 = vpop.f32.mrb[2].mxu1 }
 0x30c   : > { %v759_v54 = vpop.f32.mrb[3].mxu0  ;;  %v3141_v55 = vpop.f32.mrb[3].mxu1  ;;  %v802_v57 = vpack.c.bf16 %v801_v56, %v801_v56 }
 0x30d   : > { %977 = vrot.lane.b32.xlu0 %v971_v51, %s3829_s29  ;;  %973 = vrot.lane.b32.xlu1 %v971_v51, %s3830_s25  ;;  %v985_v14 = vrot.slane %v971_v51, %v4358_v1 }
 0x30e   : > { %v816_v25 = vrot.slane %v802_v57, %v4358_v1 }
 0x311   : > { %975 = vrot.lane.b32.xlu1 %v971_v51, %s3831_s26 }
 0x315   : > { %804 = vrot.lane.b32.xlu1 %v802_v57, %s3830_s25 }
 0x319   : > { %806 = vrot.lane.b32.xlu1 %v802_v57, %s3831_s26 }
 0x31d   : > { %808 = vrot.lane.b32.xlu1 %v802_v57, %s3829_s29 }
 0x321   : > { %1142 = vrot.lane.b32.xlu1 %v4353_v58, %s3830_s25 }
 0x37f   : > { %v978_v2 = vpop.permute.xlu0 %977  ;;  %v974_v3 = vpop.permute.xlu1 %973 }
 0x380   : > { %v1027_v6 = vrot.slane %v978_v2, %v4358_v1  ;;  %v1019_v7 = vrot.slane %v974_v3, %v4358_v1 }
 0x382   : > { %v1028_v8 = vcombine.low %v1019_v7, %v1027_v6  ;;  %v1029_v9 = vcombine.high %v1019_v7, %v1027_v6 }
 0x383   : > { %v976_v10 = vpop.permute.xlu1 %975 }
 0x384   : > { %v1036_v11 = vrot.slane %v1028_v8, %v4361_v5  ;;  %v1043_v12 = vrot.slane %v1029_v9, %v4361_v5  ;;  %v993_v13 = vrot.slane %v976_v10, %v4358_v1 }
 0x386   : > { %v1044_v15 = vcombine.high %v1036_v11, %v3827_v26  ;;  %v994_v16 = vcombine.low %v985_v14, %v993_v13  ;;  %v995_v17 = vcombine.high %v985_v14, %v993_v13  ;;  %v1045_v19 = vcombine.high %v1043_v12, %v3827_v26 }
 0x387   : > { %v805_v18 = vpop.permute.xlu1 %804  ;;  %v1051_v22 = vshrl.u32 %v1036_v11, 16  ;;  %v1067_v24 = vshrl.u32 %v1043_v12, 16 }
 0x388   : > { %v1002_v20 = vrot.slane %v994_v16, %v4361_v5  ;;  %v1009_v21 = vrot.slane %v995_v17, %v4361_v5  ;;  %v1059_v23 = vshrl.u32 %v1044_v15, 16  ;;  %v1075_v32 = vshrl.u32 %v1045_v19, 16 }
 0x389   : > { %v850_v54 = vrot.slane %v805_v18, %v4358_v1 }
 0x38a   : > { %v1010_v27 = vcombine.high %v1002_v20, %v3827_v26  ;;  %v1011_v28 = vcombine.high %v1009_v21, %v3827_v26  ;;  %v1048_v29 = vpack.i.b16 %v1036_v11, %v1002_v20  ;;  %v1050_v30 = vshrl.u32 %v1002_v20, 16 }
 0x38b   : > { %v807_v31 = vpop.permute.xlu1 %806  ;;  %v1064_v33 = vpack.i.b16 %v1043_v12, %v1009_v21  ;;  %v1066_v35 = vshrl.u32 %v1009_v21, 16 }
 0x38c   : > { %v824_v37 = vrot.slane %v807_v31, %v4358_v1  ;;  %v1052_v39 = vpack.i.b16 %v1051_v22, %v1050_v30  ;;  %v1056_v40 = vpack.i.b16 %v1044_v15, %v1010_v27  ;;  %v1058_v41 = vshrl.u32 %v1010_v27, 16 }
 0x38d   : > { %v1072_v42 = vpack.i.b16 %v1045_v19, %v1011_v28  ;;  %v1068_v43 = vpack.i.b16 %v1067_v24, %v1066_v35  ;;  %v1074_v44 = vshrl.u32 %v1011_v28, 16  ;;  %v1078_v45 = vcombine.low %v1048_v29, %v1064_v33 }
 0x38e   : > { %v825_v46 = vcombine.low %v816_v25, %v824_v37  ;;  %v1060_v47 = vpack.i.b16 %v1059_v23, %v1058_v41  ;;  %v826_v49 = vcombine.high %v816_v25, %v824_v37 }
 0x38f   : > { %v1086_v48 = vcombine.low %v1056_v40, %v1072_v42  ;;  %v809_v50 = vpop.permute.xlu1 %808  ;;  %v1076_v51 = vpack.i.b16 %v1075_v32, %v1074_v44  ;;  %v1103_v52 = vcombine.low %v1052_v39, %v1068_v43  ;;  %v1085_v59 = vrot.slane %v1078_v45, %v4358_v1 }
 0x390   : > { %v833_v53 = vrot.slane %v825_v46, %v4361_v5  ;;  %v840_v55 = vrot.slane %v826_v49, %v4361_v5  ;;  %v858_v56 = vrot.slane %v809_v50, %v4358_v1 }
 0x391   : > { %v1093_v57 = vrot.slane %v1086_v48, %v4358_v1  ;;  %v1111_v60 = vcombine.low %v1060_v47, %v1076_v51  ;;  %v1110_v3 = vrot.slane %v1103_v52, %v4358_v1 }
 0x392   : > { %v841_v61 = vcombine.high %v833_v53, %v3827_v26  ;;  %v842_v62 = vcombine.high %v840_v55, %v3827_v26  ;;  %v859_v63 = vcombine.low %v850_v54, %v858_v56  ;;  %v860_v0 = vcombine.high %v850_v54, %v858_v56 }
 0x393   : > { %v1094_v2 = vcombine.low %v1085_v59, %v1093_v57  ;;  %v1118_v6 = vrot.slane %v1111_v60, %v4358_v1  ;;  %v881_v7 = vshrl.u32 %v833_v53, 16  ;;  %v897_v11 = vshrl.u32 %v840_v55, 16 }
 0x394   : > { %v867_v8 = vrot.slane %v859_v63, %v4361_v5  ;;  %v874_v9 = vrot.slane %v860_v0, %v4361_v5  ;;  %v889_v10 = vshrl.u32 %v841_v61, 16  ;;  %v905_v12 = vshrl.u32 %v842_v62, 16 }
 0x395   : > { %v1119_v13 = vcombine.low %v1110_v3, %v1118_v6  ;;  %v1101_v20 = vrot.slane %v1094_v2, %v4361_v5 }
 0x396   : > { %v875_v14 = vcombine.high %v867_v8, %v3827_v26  ;;  %v876_v15 = vcombine.high %v874_v9, %v3827_v26  ;;  %v879_v16 = vpack.i.b16 %v867_v8, %v833_v53  ;;  %v882_v17 = vshrl.u32 %v867_v8, 16 }
 0x397   : > { %v895_v18 = vpack.i.b16 %v874_v9, %v840_v55  ;;  %v898_v19 = vshrl.u32 %v874_v9, 16  ;;  %v1126_v21 = vrot.slane %v1119_v13, %v4361_v5  ;;  %v1131_v47 = vshrl.u32 %v1101_v20, 16 }
 0x398   : > { %v883_v22 = vpack.i.b16 %v882_v17, %v881_v7  ;;  %v887_v23 = vpack.i.b16 %v875_v14, %v841_v61  ;;  %v890_v24 = vshrl.u32 %v875_v14, 16  ;;  %v903_v25 = vpack.i.b16 %v876_v15, %v842_v62 }
 0x399   : > { %v899_v27 = vpack.i.b16 %v898_v19, %v897_v11  ;;  %v906_v28 = vshrl.u32 %v876_v15, 16  ;;  %v909_v29 = vcombine.low %v879_v16, %v895_v18  ;;  %v1130_v30 = vpack.i.b16 %v1126_v21, %v1101_v20 }
 0x39a   : > { %v891_v31 = vpack.i.b16 %v890_v24, %v889_v10  ;;  %v917_v32 = vcombine.low %v887_v23, %v903_v25  ;;  %v1132_v45 = vshrl.u32 %v1126_v21, 16  ;;  %v1127_v53 = vcombine.high %v1126_v21, %v3827_v26 }
 0x39b   : > { %v907_v33 = vpack.i.b16 %v906_v28, %v905_v12  ;;  %v934_v35 = vcombine.low %v883_v22, %v899_v27  ;;  %v1314_v37 = vsel %vm1309_vm1, %v1130_v30, 0  ;;  %v916_v40 = vrot.slane %v909_v29, %v4358_v1 }
 0x39c   : > { %v924_v39 = vrot.slane %v917_v32, %v4358_v1  ;;  %3143 = vmatpush3.bf16.xpose.msra.mxu1 %v1314_v37  ;;  %v1133_v50 = vpack.i.b16 %v1132_v45, %v1131_v47  ;;  %v1102_v55 = vcombine.high %v1101_v20, %v3827_v26  ;;  %v1138_v61 = vshrl.u32 %v1127_v53, 16  ;;  %v1143_v37 = vpop.permute.xlu1 %1142 }
 0x39d   : > { %v942_v41 = vcombine.low %v891_v31, %v907_v33  ;;  %3148 = vmatprep.subr.bf16.mxu1 %v3826_v4  ;;  %v941_v43 = vrot.slane %v934_v35, %v4358_v1  ;;  %v1497_v10 = vand.u32 127, %v549_v34 }
 0x39e   : > { %v925_v42 = vcombine.low %v916_v40, %v924_v39  ;;  %v1360_v52 = vsel %vm1309_vm1, %v1133_v50, 0  ;;  %v1136_v57 = vpack.i.b16 %v1127_v53, %v1102_v55  ;;  %v1137_v63 = vshrl.u32 %v1102_v55, 16 }
 0x39f   : > { %v949_v44 = vrot.slane %v942_v41, %v4358_v1  ;;  %vm1498_vm2 = vcmp.le.s32.totalorder %v1497_v10, %v4334_v36 }
 0x3a0   : > { %v932_v48 = vrot.slane %v925_v42, %v4361_v5  ;;  %v1406_v60 = vsel %vm1309_vm1, %v1136_v57, 0  ;;  %v1139_v2 = vpack.i.b16 %v1138_v61, %v1137_v63 }
 0x3a1   : > { %v950_v46 = vcombine.low %v941_v43, %v949_v44  ;;  %v1188_v44 = vrot.slane %v1143_v37, %v4358_v1 }
 0x3a2   : > { %v962_v56 = vshrl.u32 %v932_v48, 16  ;;  %v933_v0 = vcombine.high %v932_v48, %v3827_v26  ;;  %v1452_v6 = vsel %vm1309_vm1, %v1139_v2, 0 }
 0x3a3   : > { %v957_v49 = vrot.slane %v950_v46, %v4361_v5 }
 0x3a4   : > { %v968_v8 = vshrl.u32 %v933_v0, 16 }
 0x3a5   : > { %v961_v51 = vpack.i.b16 %v957_v49, %v932_v48  ;;  %v963_v54 = vshrl.u32 %v957_v49, 16  ;;  %v958_v62 = vcombine.high %v957_v49, %v3827_v26 }
 0x3a7   : > { %3145 = vmatmul.mubr.msk.bf16.vlgmr.msra.gmra.mrb[4].mxu1 %vm1309_vm1, %v961_v51  ;;  %v964_v59 = vpack.i.b16 %v963_v54, %v962_v56  ;;  %v967_v3 = vpack.i.b16 %v958_v62, %v933_v0  ;;  %v969_v7 = vshrl.u32 %v958_v62, 16 }
 0x3a8   : > { %3149 = vmatpush3.bf16.xpose.msra.mxu1 %v1360_v52  ;;  %3150 = vmatprep.mubr.msk.bf16.mxu1 %vm3828_vm0, %v3826_v4  ;;  %v1154_v52 = vrot.slane %v4353_v58, %v4358_v1 }
 0x3a9   : > { %3154 = vmatprep.subr.bf16.mxu1 %v3826_v4  ;;  %v970_v9 = vpack.i.b16 %v969_v7, %v968_v8 }
 0x3af   : > { %3151 = vmatmul.mubr.msk.bf16.vlgmr.msra.gmra.mrb[8].mxu1 %vm1309_vm1, %v964_v59 }
 0x3b0   : > { %3155 = vmatpush3.bf16.xpose.msra.mxu1 %v1406_v60  ;;  %3156 = vmatprep.mubr.msk.bf16.mxu1 %vm3828_vm0, %v3826_v4 }
 0x3b1   : > { %3160 = vmatprep.subr.bf16.mxu1 %v3826_v4 }
 0x3b7   : > { %3157 = vmatmul.mubr.msk.bf16.vlgmr.msra.gmra.mrb[12].mxu1 %vm1309_vm1, %v967_v3 }
 0x3b8   : > { %3161 = vmatpush3.bf16.xpose.msra.mxu1 %v1452_v6  ;;  %3162 = vmatprep.mubr.msk.bf16.mxu1 %vm3828_vm0, %v3826_v4 }
 0x3b9   : > { %3172 = vmatprep.subr.bf16.mxu1 %v3826_v4 }
 0x3bf   : > { %3163 = vmatmul.mubr.msk.bf16.vlgmr.msra.gmra.mrb[16].mxu1 %vm1309_vm1, %v970_v9 }
 0x3c0   : > { %3174 = vmatprep.mubr.msk.bf16.mxu1 %vm3828_vm0, %v3826_v4 }
 0x47a   : > { %v1350_v11 = vpop.f32.mrb[4].mxu1 }
 0x47b   : > { %v1501_v12 = vsel %vm1498_vm2, %v1350_v11, -1e+30  ;;  %v3146_v13 = vpop.f32.mrb[5].mxu1 }
 0x47c   : > { %v1353_v14 = vpop.f32.mrb[6].mxu1  ;;  %v1506_v15 = vsel %vm1505_vm3, %v1501_v12, -inf }
 0x47d   : > { %1507 = vmax.xlane.f32.xlu1 %v1506_v15  ;;  %v3147_v16 = vpop.f32.mrb[7].mxu1 }
 0x482   : > { %v1396_v17 = vpop.f32.mrb[8].mxu1 }
 0x483   : > { %v1502_v18 = vsel %vm1498_vm2, %v1396_v17, -1e+30  ;;  %v3152_v19 = vpop.f32.mrb[9].mxu1 }
 0x484   : > { %v1399_v20 = vpop.f32.mrb[10].mxu1  ;;  %v1509_v34 = vsel %vm1505_vm3, %v1502_v18, -inf }
 0x485   : > { %1510 = vmax.xlane.f32.xlu0 %v1509_v34  ;;  %v3153_v21 = vpop.f32.mrb[11].mxu1 }
 0x48a   : > { %v1442_v22 = vpop.f32.mrb[12].mxu1 }
 0x48b   : > { %v3158_v23 = vpop.f32.mrb[13].mxu1  ;;  %v4437_v31 = vsel %vm1498_vm2, %v1442_v22, -1e+30 }
 0x48c   : > { %v1445_v24 = vpop.f32.mrb[14].mxu1  ;;  %v1512_v32 = vsel %vm1505_vm3, %v4437_v31, -inf }
 0x48d   : > { %v3159_v25 = vpop.f32.mrb[15].mxu1 }
 0x48e   : > { %1146 = vrot.lane.b32.xlu1 %v4353_v58, %s3829_s29 }
 0x492   : > { %v1488_v27 = vpop.f32.mrb[16].mxu1 }
 0x493   : > { %v3164_v28 = vpop.f32.mrb[17].mxu1  ;;  %v4443_v33 = vsel %vm1498_vm2, %v1488_v27, -1e+30 }
 0x494   : > { %v1491_v29 = vpop.f32.mrb[18].mxu1  ;;  %v1515_v35 = vsel %vm1505_vm3, %v4443_v33, -inf }
 0x495   : > { %v3165_v30 = vpop.f32.mrb[19].mxu1 }
 0x49b   : > { %1144 = vrot.lane.b32.xlu0 %v4353_v58, %s3831_s26 }
 0x4b2   : > { %1513 = vmax.xlane.f32.xlu1 %v1512_v32 }
 0x4ba   : > { %1516 = vmax.xlane.f32.xlu0 %v1515_v35 }
 0x50a   : > { %v1508_v39 = vpop.xlane.xlu1 %1507 }
 0x50b   : > { %v1518_v40 = vsub.f32 %v1501_v12, %v1508_v39 }
 0x50d   : > { %v1522_v41 = vmul.f32 1.442695, %v1518_v40 }
 0x50e   : > { %v1147_v42 = vpop.permute.xlu1 %1146 }
 0x50f   : > { %3476 = vpow2.f32 %v1522_v41  ;;  %v1196_v43 = vrot.slane %v1147_v42, %v4358_v1 }
 0x511   : > { %v1197_v45 = vcombine.low %v1188_v44, %v1196_v43  ;;  %v1198_v48 = vcombine.high %v1188_v44, %v1196_v43 }
 0x512   : > { %v1511_v46 = vpop.xlane.xlu0 %1510 }
 0x513   : > { %v1519_v47 = vsub.f32 %v1502_v18, %v1511_v46  ;;  %v1205_v49 = vrot.slane %v1197_v45, %v4361_v5  ;;  %v1212_v54 = vrot.slane %v1198_v48, %v4361_v5 }
 0x515   : > { %v1524_v50 = vmul.f32 1.442695, %v1519_v47  ;;  %v1213_v59 = vcombine.high %v1205_v49, %v3827_v26  ;;  %v1214_v63 = vcombine.high %v1212_v54, %v3827_v26  ;;  %v1220_v58 = vshrl.u32 %v1205_v49, 16 }
 0x516   : > { %v1145_v51 = vpop.permute.xlu0 %1144  ;;  %v1236_v8 = vshrl.u32 %v1212_v54, 16 }
 0x517   : > { %v1162_v53 = vrot.slane %v1145_v51, %v4358_v1  ;;  %3478 = vpow2.f32 %v1524_v50  ;;  %v1228_v7 = vshrl.u32 %v1213_v59, 16  ;;  %v1244_v15 = vshrl.u32 %v1214_v63, 16 }
 0x519   : > { %v3477_v55 = vpop.eup %3476  ;;  %v1163_v56 = vcombine.low %v1154_v52, %v1162_v53  ;;  %v1164_v57 = vcombine.high %v1154_v52, %v1162_v53 }
 0x51a   : > { %v1530_v60 = vsel %vm1505_vm3, %v3477_v55, 0.0  ;;  %v1542_v50 = vpack.c.bf16 %v3477_v55, %v3477_v55 }
 0x51b   : > { %v1171_v61 = vrot.slane %v1163_v56, %v4361_v5  ;;  %v1178_v62 = vrot.slane %v1164_v57, %v4361_v5  ;;  %1531 = vadd.xlane.f32.xlu1 %v1530_v60 }
 0x51d   : > { %v1179_v0 = vcombine.high %v1171_v61, %v3827_v26  ;;  %v1180_v2 = vcombine.high %v1178_v62, %v3827_v26  ;;  %v1217_v3 = vpack.i.b16 %v1205_v49, %v1171_v61  ;;  %v1219_v6 = vshrl.u32 %v1171_v61, 16 }
 0x51e   : > { %v1233_v9 = vpack.i.b16 %v1212_v54, %v1178_v62  ;;  %v1235_v10 = vshrl.u32 %v1178_v62, 16 }
 0x51f   : > { %v1221_v11 = vpack.i.b16 %v1220_v58, %v1219_v6  ;;  %v1225_v12 = vpack.i.b16 %v1213_v59, %v1179_v0  ;;  %v1227_v13 = vshrl.u32 %v1179_v0, 16  ;;  %v1241_v14 = vpack.i.b16 %v1214_v63, %v1180_v2  ;;  %v3388_v6 = vld [vmem:[%s4279_s12 + $0x10] sm:$0xff]  }
 0x520   : > { %v1237_v16 = vpack.i.b16 %v1236_v8, %v1235_v10  ;;  %v1243_v17 = vshrl.u32 %v1180_v2, 16  ;;  %v1247_v18 = vcombine.low %v1217_v3, %v1233_v9  ;;  %v3386_v2 = vld [vmem:[%s4279_s12] sm:$0xff]   ;;  %v3387_v3 = vld [vmem:[%s4279_s12 + $0x8] sm:$0xff]  }
 0x521   : > { %v1229_v19 = vpack.i.b16 %v1228_v7, %v1227_v13  ;;  %v1255_v20 = vcombine.low %v1225_v12, %v1241_v14  ;;  %v3479_v34 = vpop.eup %3478  ;;  %v3389_v7 = vld [vmem:[%s4279_s12 + $0x18] sm:$0xff]   ;;  %v3390_v8 = vld [vmem:[%s4279_s12 + $0x20] sm:$0xff]   ;;  %v3391_v9 = vld [vmem:[%s4279_s12 + $0x28] sm:$0xff]  }
 0x522   : > { %v1245_v21 = vpack.i.b16 %v1244_v15, %v1243_v17  ;;  %v1272_v22 = vcombine.low %v1221_v11, %v1237_v16  ;;  %v1254_v23 = vrot.slane %v1247_v18, %v4358_v1  ;;  %v1533_v24 = vsel %vm1505_vm3, %v3479_v34, 0.0 }
 0x523   : > { %v1262_v25 = vrot.slane %v1255_v20, %v4358_v1  ;;  %1534 = vadd.xlane.f32.xlu0 %v1533_v24  ;;  %v1543_v53 = vpack.c.bf16 %v3479_v34, %v3479_v34 }
 0x524   : > { %v1280_v27 = vcombine.low %v1229_v19, %v1245_v21  ;;  %v1279_v29 = vrot.slane %v1272_v22, %v4358_v1 }
 0x525   : > { %v1263_v28 = vcombine.low %v1254_v23, %v1262_v25 }
 0x526   : > { %v1287_v30 = vrot.slane %v1280_v27, %v4358_v1 }
 0x527   : > { %v1270_v32 = vrot.slane %v1263_v28, %v4361_v5 }
 0x528   : > { %v1288_v35 = vcombine.low %v1279_v29, %v1287_v30 }
 0x529   : > { %v1271_v37 = vcombine.high %v1270_v32, %v3827_v26  ;;  %v1300_v41 = vshrl.u32 %v1270_v32, 16 }
 0x52a   : > { %v1295_v39 = vrot.slane %v1288_v35, %v4361_v5 }
 0x52b   : > { %v1306_v44 = vshrl.u32 %v1271_v37, 16 }
 0x52c   : > { %v1299_v40 = vpack.i.b16 %v1295_v39, %v1270_v32  ;;  %v1301_v42 = vshrl.u32 %v1295_v39, 16  ;;  %v1296_v43 = vcombine.high %v1295_v39, %v3827_v26 }
 0x52e   : > { %v1551_v45 = vsel %vm1549_vm4, %v1299_v40, 0  ;;  %v1302_v46 = vpack.i.b16 %v1301_v42, %v1300_v41  ;;  %v1305_v47 = vpack.i.b16 %v1296_v43, %v1271_v37  ;;  %v1307_v48 = vshrl.u32 %v1296_v43, 16 }
 0x52f   : > { %3167 = vmatpush3.bf16.msra.mxu0 %v1551_v45 }
 0x530   : > { %v1597_v49 = vsel %vm1549_vm4, %v1302_v46, 0  ;;  %3178 = vmatprep.subr.bf16.mxu0 %v3826_v4  ;;  %v1308_v51 = vpack.i.b16 %v1307_v48, %v1306_v44  ;;  %v1643_v52 = vsel %vm1549_vm4, %v1305_v47, 0 }
 0x531   : > { %3173 = vmatpush3.bf16.msra.mxu1 %v1597_v49 }
 0x532   : > { %3169 = vmatmul.mubr.msk.bf16.vlgmr.msra.gmra.mrb[4].mxu0 %vm1505_vm3, %v1542_v50  ;;  %3184 = vmatprep.subr.bf16.mxu1 %v3826_v4  ;;  %v1689_v54 = vsel %vm1549_vm4, %v1308_v51, 0 }
 0x533   : > { %3179 = vmatpush3.bf16.msra.mxu0 %v1643_v52  ;;  %3180 = vmatprep.mubr.msk.bf16.mxu0 %vm3828_vm0, %v3826_v4 }
 0x534   : > { %3175 = vmatmul.mubr.msk.bf16.vlgmr.msra.gmra.mrb[20].mxu1 %vm1505_vm3, %v1543_v53  ;;  %3190 = vmatprep.subr.bf16.mxu0 %v3826_v4 }
 0x535   : > { %3185 = vmatpush3.bf16.msra.mxu1 %v1689_v54  ;;  %3186 = vmatprep.mubr.msk.bf16.mxu1 %vm3828_vm0, %v3826_v4 }
 0x53f   : > { %v1514_v55 = vpop.xlane.xlu1 %1513 }
 0x540   : > { %v1520_v56 = vsub.f32 %v4437_v31, %v1514_v55  ;;  %v3392_v55 = vld [vmem:[%s4279_s12 + $0x30] sm:$0xff]  }
 0x542   : > { %v1526_v57 = vmul.f32 1.442695, %v1520_v56 }
 0x544   : > { %3480 = vpow2.f32 %v1526_v57 }
 0x547   : > { %v1517_v59 = vpop.xlane.xlu0 %1516 }
 0x548   : > { %v1521_v60 = vsub.f32 %v4443_v33, %v1517_v59 }
 0x54a   : > { %v1528_v61 = vmul.f32 1.442695, %v1521_v60 }
 0x54c   : > { %3482 = vpow2.f32 %v1528_v61 }
 0x54e   : > { %v3481_v62 = vpop.eup %3480 }
 0x54f   : > { %v1536_v63 = vsel %vm1505_vm3, %v3481_v62, 0.0  ;;  %v1544_v58 = vpack.c.bf16 %v3481_v62, %v3481_v62 }
 0x550   : > { %1537 = vadd.xlane.f32.xlu1 %v1536_v63 }
 0x551   : > { %3181 = vmatmul.mubr.msk.bf16.vlgmr.msra.gmra.mrb[8].mxu0 %vm1505_vm3, %v1544_v58 }
 0x552   : > { %3206 = vmatprep.mubr.msk.bf16.mxu0 %vm3828_vm0, %v3826_v4  ;;  %3191 = vmatpush3.bf16.msra.mxu0 %v3386_v2 }
 0x553   : > { %3192 = vmatprep.subr.bf16.mxu0 %v3826_v4 }
 0x556   : > { %v3483_v31 = vpop.eup %3482  ;;  %3193 = vmatpush3.bf16.msra.mxu0 %v3387_v3  ;;  %v3393_v3 = vld [vmem:[%s4279_s12 + $0x38] sm:$0xff]  }
 0x557   : > { %v1539_v0 = vsel %vm1505_vm3, %v3483_v31, 0.0  ;;  %v1545_v33 = vpack.c.bf16 %v3483_v31, %v3483_v31  ;;  %3194 = vmatprep.subr.bf16.mxu0 %v3826_v4 }
 0x558   : > { %1540 = vadd.xlane.f32.xlu0 %v1539_v0 }
 0x559   : > { %3187 = vmatmul.mubr.msk.bf16.vlgmr.msra.gmra.mrb[24].mxu1 %vm1505_vm3, %v1545_v33 }
 0x55a   : > { %2264 = vmatprep.mubr.bf16.mxu1 %v3827_v26  ;;  %3195 = vmatpush3.bf16.msra.mxu0 %v3388_v6 }
 0x55b   : > { %3196 = vmatprep.subr.bf16.mxu0 %v3826_v4 }
 0x55e   : > { %3197 = vmatpush3.bf16.msra.mxu0 %v3389_v7 }
 0x55f   : > { %3198 = vmatprep.subr.bf16.mxu0 %v3826_v4 }
 0x562   : > { %3199 = vmatpush3.bf16.msra.mxu0 %v3390_v8 }
 0x563   : > { %3200 = vmatprep.subr.bf16.mxu0 %v3826_v4 }
 0x566   : > { %3201 = vmatpush3.bf16.msra.mxu0 %v3391_v9 }
 0x567   : > { %3202 = vmatprep.subr.bf16.mxu0 %v3826_v4 }
 0x56a   : > { %3203 = vmatpush3.bf16.msra.mxu0 %v3392_v55  ;;  %v3423_v55 = vld [vmem:[%s4285_s7 + $0x8c] ss:$16 sps:$4 sm:$0xff]  }
 0x56b   : > { %3204 = vmatprep.subr.bf16.mxu0 %v3826_v4 }
 0x56e   : > { %3205 = vmatpush3.bf16.msra.mxu0 %v3393_v3  ;;  %v3436_v3 = vld [vmem:[%s4285_s7 + $0xe0] ss:$16 sps:$4 sm:$0xff]  }
 0x5a8   : > { %v1532_v18 = vpop.xlane.xlu1 %1531 }
 0x5a9   : > { %3484 = vrcp.f32 %v1532_v18 }
 0x5b0   : > { %v1535_v20 = vpop.xlane.xlu0 %1534 }
 0x5b3   : > { %v3485_v21 = vpop.eup %3484 }
 0x5dd   : > { %v1538_v19 = vpop.xlane.xlu1 %1537 }
 0x5de   : > { %3486 = vrcp.f32 %v1538_v19 }
 0x5df   : > { %3488 = vrcp.f32 %v1535_v20 }
 0x5e5   : > { %v1541_v34 = vpop.xlane.xlu0 %1540 }
 0x5e6   : > { %3490 = vrcp.f32 %v1541_v34 }
 0x5e8   : > { %v3487_v22 = vpop.eup %3486 }
 0x5e9   : > { %v3489_v35 = vpop.eup %3488 }
 0x5f0   : > { %v3491_v37 = vpop.eup %3490 }
 0x605   : > { %v1587_v10 = vpop.f32.mrb[4].mxu0 }
 0x606   : > { %v3170_v11 = vpop.f32.mrb[5].mxu0  ;;  %v1735_v24 = vmul.f32 %v3485_v21, %v1587_v10  ;;  %v1911_v21 = vsub.s32 2, %v4334_v36 }
 0x607   : > { %v1590_v12 = vpop.f32.mrb[6].mxu0  ;;  %v1633_v13 = vpop.f32.mrb[20].mxu1 }
 0x608   : > { %v3171_v14 = vpop.f32.mrb[7].mxu0  ;;  %v3176_v15 = vpop.f32.mrb[21].mxu1  ;;  %v1736_v40 = vmul.f32 %v3489_v35, %v1633_v13  ;;  %v3397_v35 = vld [vmem:[%s4285_s7 + $0x8] ss:$16 sps:$4 sm:$0xff]  }
 0x609   : > { %v1636_v16 = vpop.f32.mrb[22].mxu1 }
 0x60a   : > { %v3177_v17 = vpop.f32.mrb[23].mxu1 }
 0x624   : > { %v1679_v23 = vpop.f32.mrb[8].mxu0 }
 0x625   : > { %v1737_v25 = vmul.f32 %v3487_v22, %v1679_v23  ;;  %v3182_v27 = vpop.f32.mrb[9].mxu0  ;;  %v1912_v22 = vrot.slane %v4338_v38, %v1911_v21  ;;  %v3402_v38 = vld [vmem:[%s4285_s7 + $0x24] ss:$16 sps:$4 sm:$0xff]   ;;  %v3447_v21 = vld [vmem:[%s4287_s20 + $0xc8] sm:$0xff]  }
 0x626   : > { %v1682_v28 = vpop.f32.mrb[10].mxu0 }
 0x627   : > { %v1739_v29 = vcombine.low %v1735_v24, %v1737_v25  ;;  %v1740_v30 = vcombine.high %v1735_v24, %v1737_v25  ;;  %v3183_v32 = vpop.f32.mrb[11].mxu0  ;;  %v3494_v28 = vld [vmem:[#allocation2] sm:$0xff] }
 0x628   : > { %v3396_v32 = vld [vmem:[%s4285_s7 + $0x4] ss:$16 sps:$4 sm:$0xff]  }
 0x629   : > { %v1747_v47 = vrot.slane %v1739_v29, %v4358_v1  ;;  %v1754_v48 = vrot.slane %v1740_v30, %v4358_v1  ;;  %2232 = vmatprep.subr.bf16.mxu1 %v3396_v32  ;;  %v3456_v32 = vld [vmem:[%s4287_s20 + $0x18] sm:$0xff]  }
 0x62c   : > { %v1725_v39 = vpop.f32.mrb[24].mxu1 }
 0x62d   : > { %v1738_v41 = vmul.f32 %v3491_v37, %v1725_v39  ;;  %v3188_v42 = vpop.f32.mrb[25].mxu1  ;;  %v3399_v37 = vld [vmem:[%s4285_s7 + $0xc] ss:$16 sps:$4 sm:$0xff]  }
 0x62e   : > { %v1728_v43 = vpop.f32.mrb[26].mxu1  ;;  %v3405_v39 = vld [vmem:[%s4285_s7 + $0x2c] ss:$16 sps:$4 sm:$0xff]   ;;  %2273 = vmatprep.subr.bf16.mxu0 %v3399_v37  ;;  %v3408_v42 = vld [vmem:[%s4285_s7 + $0x44] ss:$16 sps:$4 sm:$0xff]  }
 0x62f   : > { %v1755_v44 = vcombine.low %v1736_v40, %v1738_v41  ;;  %v1756_v45 = vcombine.high %v1736_v40, %v1738_v41  ;;  %v3189_v46 = vpop.f32.mrb[27].mxu1  ;;  %v3400_v40 = vld [vmem:[%s4285_s7 + $0x20] ss:$16 sps:$4 sm:$0xff]   ;;  %v3403_v41 = vld [vmem:[%s4285_s7 + $0x28] ss:$16 sps:$4 sm:$0xff]  }
 0x630   : > { %v3411_v43 = vld [vmem:[%s4285_s7 + $0x4c] ss:$16 sps:$4 sm:$0xff]   ;;  %v3458_v37 = vld [vmem:[%s4287_s20 + $0x60] sm:$0xff]  }
 0x631   : > { %v1763_v49 = vrot.slane %v1755_v44, %v4358_v1  ;;  %v1770_v50 = vrot.slane %v1756_v45, %v4358_v1  ;;  %v3406_v44 = vld [vmem:[%s4285_s7 + $0x40] ss:$16 sps:$4 sm:$0xff]   ;;  %v3409_v45 = vld [vmem:[%s4285_s7 + $0x48] ss:$16 sps:$4 sm:$0xff]  }
 0x633   : > { %v1771_v51 = vcombine.low %v1747_v47, %v1763_v49  ;;  %v1772_v52 = vcombine.high %v1747_v47, %v1763_v49  ;;  %v1787_v53 = vcombine.low %v1754_v48, %v1770_v50  ;;  %v1788_v54 = vcombine.high %v1754_v48, %v1770_v50  ;;  %v3414_v50 = vld [vmem:[%s4285_s7 + $0x64] ss:$16 sps:$4 sm:$0xff]  }
 0x635   : > { %v1779_v56 = vrot.slane %v1771_v51, %v4361_v5  ;;  %v1786_v57 = vrot.slane %v1772_v52, %v4361_v5  ;;  %v1795_v59 = vrot.slane %v1787_v53, %v4361_v5  ;;  %v1802_v60 = vrot.slane %v1788_v54, %v4361_v5  ;;  %v3417_v51 = vld [vmem:[%s4285_s7 + $0x6c] ss:$16 sps:$4 sm:$0xff]   ;;  %v3412_v52 = vld [vmem:[%s4285_s7 + $0x60] ss:$16 sps:$4 sm:$0xff]   ;;  %v3415_v53 = vld [vmem:[%s4285_s7 + $0x68] ss:$16 sps:$4 sm:$0xff]  }
 0x636   : > { %v3420_v54 = vld [vmem:[%s4285_s7 + $0x84] ss:$16 sps:$4 sm:$0xff]  }
 0x637   : > { %v1807_v61 = vcombine.low %v1779_v56, %v1786_v57  ;;  %v2959_v62 = vcombine.high %v1779_v56, %v1786_v57  ;;  %v1823_v63 = vcombine.low %v1795_v59, %v1802_v60  ;;  %v2960_v58 = vcombine.high %v1795_v59, %v1802_v60  ;;  %v3418_v56 = vld [vmem:[%s4285_s7 + $0x80] ss:$16 sps:$4 sm:$0xff]   ;;  %v3421_v57 = vld [vmem:[%s4285_s7 + $0x88] ss:$16 sps:$4 sm:$0xff]   ;;  %v3426_v59 = vld [vmem:[%s4285_s7 + $0xa4] ss:$16 sps:$4 sm:$0xff]  }
 0x638   : > { %v3429_v60 = vld [vmem:[%s4285_s7 + $0xac] ss:$16 sps:$4 sm:$0xff]  }
 0x639   : > { %v1814_v31 = vrot.slane %v1807_v61, %v4358_v1  ;;  %v1822_v0 = vrot.slane %v2959_v62, %v4358_v1  ;;  %v1830_v33 = vrot.slane %v1823_v63, %v4358_v1  ;;  %v1838_v2 = vrot.slane %v2960_v58, %v4358_v1  ;;  %v3424_v61 = vld [vmem:[%s4285_s7 + $0xa0] ss:$16 sps:$4 sm:$0xff]   ;;  %v3427_v62 = vld [vmem:[%s4285_s7 + $0xa8] ss:$16 sps:$4 sm:$0xff]   ;;  %v3432_v58 = vld [vmem:[%s4285_s7 + $0xc4] ss:$16 sps:$4 sm:$0xff]  }
 0x63a   : > { %v3430_v63 = vld [vmem:[%s4285_s7 + $0xc0] ss:$16 sps:$4 sm:$0xff]  }
 0x63b   : > { %v1840_v6 = vcombine.high %v1814_v31, %v1822_v0  ;;  %v1856_v7 = vcombine.high %v1830_v33, %v1838_v2  ;;  %v1839_v8 = vcombine.low %v1814_v31, %v1822_v0  ;;  %v1855_v9 = vcombine.low %v1830_v33, %v1838_v2  ;;  %v3433_v31 = vld [vmem:[%s4285_s7 + $0xc8] ss:$16 sps:$4 sm:$0xff]   ;;  %v3435_v0 = vld [vmem:[%s4285_s7 + $0xcc] ss:$16 sps:$4 sm:$0xff]   ;;  %v3438_v33 = vld [vmem:[%s4285_s7 + $0xe4] ss:$16 sps:$4 sm:$0xff]  }
 0x63c   : > { %v3441_v2 = vld [vmem:[%s4285_s7 + $0xec] ss:$16 sps:$4 sm:$0xff]  }
 0x63d   : > { %v1854_v10 = vrot.slane %v1840_v6, %v4361_v5  ;;  %v1870_v11 = vrot.slane %v1856_v7, %v4361_v5  ;;  %v1847_v4 = vrot.slane %v1839_v8, %v4361_v5  ;;  %v1863_v12 = vrot.slane %v1855_v9, %v4361_v5  ;;  %v3439_v6 = vld [vmem:[%s4285_s7 + $0xe8] ss:$16 sps:$4 sm:$0xff]   ;;  %v3442_v7 = vld [vmem:[%s4287_s20 + $0x40] sm:$0xff]  }
 0x63e   : > { %v3443_v8 = vld [vmem:[%s4287_s20 + $0xc0] sm:$0xff]  }
 0x63f   : > { %v1873_v13 = vcombine.low %v1854_v10, %v1870_v11  ;;  %v1872_v14 = vcombine.high %v1847_v4, %v1863_v12  ;;  %v1874_v15 = vcombine.high %v1854_v10, %v1870_v11  ;;  %v1871_v16 = vcombine.low %v1847_v4, %v1863_v12 }
 0x640   : > { %v2015_v4 = vsub.s32 3, %v4334_v36  ;;  %v2020_v12 = vsub.s32 4, %v4334_v36 }
 0x641   : > { %1880 = vrot.lane.b32.xlu0 %v1873_v13, %s3831_s26  ;;  %1876 = vrot.lane.b32.xlu1 %v1872_v14, %s3829_s29  ;;  %v4571_v13 = vld [vmem:[%s4271_s10] sm:$0xff] }
 0x642   : > { %v2016_v14 = vrot.slane %v4571_v13, %v2015_v4 }
 0x645   : > { %1884 = vrot.lane.b32.xlu1 %v1874_v15, %s3830_s25 }
 0x6b3   : > { %v1877_v1 = vpop.permute.xlu1 %1876  ;;  %v1881_v17 = vpop.permute.xlu0 %1880 }
 0x6b4   : > { %v1887_v18 = vsel %vm1309_vm1, %v1871_v16, %v1877_v1  ;;  %v2021_v1 = vrot.slane %v4571_v13, %v2020_v12 }
 0x6b5   : > { %v1889_v20 = vsel %vm1888_vm5, %v1887_v18, %v1881_v17 }
 0x6b7   : > { %v1885_v19 = vpop.permute.xlu1 %1884 }
 0x6b8   : > { %v1891_v5 = vsel %vm1890_vm6, %v1889_v20, %v1885_v19  ;;  %v3444_v19 = vld [vmem:[%s4287_s20] sm:$0xff]  }
 0x6b9   : > { %v1892_v34 = vpack.c.bf16 %v1891_v5, %v1891_v5  ;;  %v3445_v20 = vld [vmem:[%s4287_s20 + $0x80] sm:$0xff]  }
 0x6bb   : > { %3207 = vmatmul.mubr.bf16.vlgmr.msra.gmra.mrb[12].mxu0 %v1892_v34  ;;  %v3446_v34 = vld [vmem:[%s4287_s20 + $0x48] sm:$0xff]  }
 0x6bc   : > { %2305 = vmatprep.mubr.bf16.mxu0 %v3827_v26  ;;  %v3394_v26 = vld [vmem:[%s4285_s7] ss:$16 sps:$4 sm:$0xff]   ;;  %2274 = vmatpush1.bf16.msra.mxu0 %v3397_v35  ;;  %v3457_v35 = vld [vmem:[%s4287_s20 + $0x98] sm:$0xff]  }
 0x6bd   : > { %2233 = vmatpush1.bf16.msra.mxu1 %v3394_v26  ;;  %2275 = vmatprep.subr.bf16.mxu0 %v3405_v39  ;;  %v3455_v26 = vld [vmem:[%s4287_s20 + $0xd8] sm:$0xff]   ;;  %v3460_v39 = vld [vmem:[%s4287_s20 + $0x20] sm:$0xff]  }
 0x6be   : > { %2234 = vmatprep.subr.bf16.mxu1 %v3402_v38  ;;  %v3459_v38 = vld [vmem:[%s4287_s20 + $0xe0] sm:$0xff]  }
 0x6c0   : > { %2276 = vmatpush1.bf16.msra.mxu0 %v3403_v41  ;;  %v3462_v41 = vld [vmem:[%s4287_s20 + $0x68] sm:$0xff]  }
 0x6c1   : > { %2235 = vmatpush1.bf16.msra.mxu1 %v3400_v40  ;;  %2277 = vmatprep.subr.bf16.mxu0 %v3411_v43  ;;  %v3461_v40 = vld [vmem:[%s4287_s20 + $0xa0] sm:$0xff]   ;;  %v3464_v43 = vld [vmem:[%s4287_s20 + $0x28] sm:$0xff]  }
 0x6c2   : > { %2236 = vmatprep.subr.bf16.mxu1 %v3408_v42  ;;  %v3463_v42 = vld [vmem:[%s4287_s20 + $0xe8] sm:$0xff]  }
 0x6c4   : > { %2278 = vmatpush1.bf16.msra.mxu0 %v3409_v45  ;;  %v3466_v45 = vld [vmem:[%s4287_s20 + $0x70] sm:$0xff]  }
 0x6c5   : > { %2237 = vmatpush1.bf16.msra.mxu1 %v3406_v44  ;;  %2279 = vmatprep.subr.bf16.mxu0 %v3417_v51  ;;  %v3465_v44 = vld [vmem:[%s4287_s20 + $0xa8] sm:$0xff]   ;;  %v3472_v51 = vld [vmem:[%s4287_s20 + $0x38] sm:$0xff]  }
 0x6c6   : > { %2238 = vmatprep.subr.bf16.mxu1 %v3414_v50  ;;  %v3471_v50 = vld [vmem:[%s4287_s20 + $0xf8] sm:$0xff]  }
 0x6c8   : > { %2280 = vmatpush1.bf16.msra.mxu0 %v3415_v53  ;;  %v2058_v53 = vsub.s32 6, %v4334_v36 }
 0x6c9   : > { %2239 = vmatpush1.bf16.msra.mxu1 %v3412_v52  ;;  %2281 = vmatprep.subr.bf16.mxu0 %v3423_v55  ;;  %v3473_v52 = vld [vmem:[%s4287_s20 + $0xb8] sm:$0xff]   ;;  %v534_v55 = vld [vmem:[%s4271_s10 + $0x8] sm:$0xff] }
 0x6ca   : > { %2240 = vmatprep.subr.bf16.mxu1 %v3420_v54  ;;  %v535_v54 = vld [vmem:[%s4271_s10 + $0x10] sm:$0xff] }
 0x6cc   : > { %2282 = vmatpush1.bf16.msra.mxu0 %v3421_v57  ;;  %v2059_v57 = vrot.slane %v4571_v13, %v2058_v53 }
 0x6cd   : > { %2241 = vmatpush1.bf16.msra.mxu1 %v3418_v56  ;;  %2283 = vmatprep.subr.bf16.mxu0 %v3429_v60  ;;  %v536_v56 = vld [vmem:[%s4271_s10 + $0x18] sm:$0xff]  ;;  %v2063_v60 = vrot.slane %v534_v55, %v2058_v53 }
 0x6ce   : > { %2242 = vmatprep.subr.bf16.mxu1 %v3426_v59  ;;  %v2067_v59 = vrot.slane %v535_v54, %v2058_v53 }
 0x6d0   : > { %2284 = vmatpush1.bf16.msra.mxu0 %v3427_v62 }
 0x6d1   : > { %2243 = vmatpush1.bf16.msra.mxu1 %v3424_v61  ;;  %2285 = vmatprep.subr.bf16.mxu0 %v3435_v0  ;;  %v2071_v61 = vrot.slane %v536_v56, %v2058_v53 }
 0x6d2   : > { %2244 = vmatprep.subr.bf16.mxu1 %v3432_v58 }
 0x6d4   : > { %2286 = vmatpush1.bf16.msra.mxu0 %v3433_v31 }
 0x6d5   : > { %2245 = vmatpush1.bf16.msra.mxu1 %v3430_v63  ;;  %2287 = vmatprep.subr.bf16.mxu0 %v3441_v2 }
 0x6d6   : > { %2246 = vmatprep.subr.bf16.mxu1 %v3438_v33 }
 0x6d8   : > { %2288 = vmatpush1.bf16.msra.mxu0 %v3439_v6 }
 0x6d9   : > { %2247 = vmatpush1.bf16.msra.mxu1 %v3436_v3  ;;  %3100 = vmatprep.subr.bf16.mxu0 %v3443_v8 }
 0x6da   : > { %3078 = vmatprep.subr.bf16.mxu1 %v3442_v7 }
 0x78e   : > { %v1995_v23 = vpop.f32.mrb[12].mxu0 }
 0x78f   : > { %v1996_v24 = vadd.f32 %v1995_v23, %v1912_v22  ;;  %v3208_v25 = vpop.f32.mrb[13].mxu0  ;;  %v3448_v22 = vld [vmem:[%s4287_s20 + $0x8] sm:$0xff]  }
 0x790   : > { %v1998_v27 = vpop.f32.mrb[14].mxu0  ;;  %v3449_v23 = vld [vmem:[%s4287_s20 + $0x88] sm:$0xff]   ;;  %v3451_v25 = vld [vmem:[%s4287_s20 + $0xd0] sm:$0xff]  }
 0x791   : > { %v4530_v29 = vadd.f32 %v3494_v28, %v1996_v24  ;;  %v3209_v30 = vpop.f32.mrb[15].mxu0  ;;  %v3450_v24 = vld [vmem:[%s4287_s20 + $0x50] sm:$0xff]  }
 0x792   : > { %v3452_v27 = vld [vmem:[%s4287_s20 + $0x10] sm:$0xff]   ;;  %v3454_v30 = vld [vmem:[%s4287_s20 + $0x58] sm:$0xff]  }
 0x793   : > { %2002 = vadd.xlane.f32.xlu1 %v4530_v29  ;;  %v3453_v28 = vld [vmem:[%s4287_s20 + $0x90] sm:$0xff]  }
 0x820   : > { %v2003_v46 = vpop.xlane.xlu1 %2002 }
 0x821   : > { %v2004_v47 = vmul.f32 0.0078125, %v2003_v46  ;;  %v3467_v46 = vld [vmem:[%s4287_s20 + $0xf0] sm:$0xff]  }
 0x823   : > { %v2005_v48 = vsub.f32 %v4530_v29, %v2004_v47  ;;  %v3468_v47 = vld [vmem:[%s4287_s20 + $0x30] sm:$0xff]  }
 0x825   : > { %v2006_v49 = vmul.f32 %v2005_v48, %v2005_v48 }
 0x827   : > { %2007 = vadd.xlane.f32.xlu0 %v2006_v49  ;;  %v3470_v49 = vld [vmem:[%s4287_s20 + $0x78] sm:$0xff]  }
 0x8b4   : > { %v2008_v9 = vpop.xlane.xlu0 %2007 }
 0x8b5   : > { %v2009_v10 = vmul.f32 0.0078125, %v2008_v9 }
 0x8b7   : > { %v2010_v11 = vadd.f32 1e-05, %v2009_v10 }
 0x8b9   : > { %3492 = vrsqrt.f32 %v2010_v11 }
 0x8c3   : > { %v3493_v15 = vpop.eup %3492 }
 0x8c4   : > { %v2012_v16 = vmul.f32 %v3493_v15, %v2005_v48  ;;  %v3469_v48 = vld [vmem:[%s4287_s20 + $0xb0] sm:$0xff]  }
 0x8c6   : > { %v2017_v17 = vmul.f32 %v2016_v14, %v2012_v16 }
 0x8c8   : > { %v2022_v18 = vadd.f32 %v2021_v1, %v2017_v17  ;;  %v2388_v17 = vsub.s32 5, %v4334_v36 }
 0x8ca   : > { %v2023_v5 = vpack.c.bf16 %v2022_v18, %v2022_v18 }
 0x8cc   : > { %2265 = vmatmul.mubr.bf16.vlgmr.msra.gmra.mrb[28].mxu1 %v2023_v5  ;;  %2306 = vmatmul.mubr.bf16.vlgmr.msra.gmra.mrb[16].mxu0 %v2023_v5 }
 0x8cd   : > { %3079 = vmatpush3.bf16.msra.mxu1 %v3444_v19  ;;  %3101 = vmatpush3.bf16.msra.mxu0 %v3445_v20  ;;  %v2389_v20 = vrot.slane %v4571_v13, %v2388_v17 }
 0x8ce   : > { %3080 = vmatprep.subr.bf16.mxu1 %v3446_v34  ;;  %3102 = vmatprep.subr.bf16.mxu0 %v3447_v21 }
 0x8d1   : > { %3081 = vmatpush3.bf16.msra.mxu1 %v3448_v22  ;;  %3103 = vmatpush3.bf16.msra.mxu0 %v3449_v23 }
 0x8d2   : > { %3082 = vmatprep.subr.bf16.mxu1 %v3450_v24  ;;  %3104 = vmatprep.subr.bf16.mxu0 %v3451_v25 }
 0x8d5   : > { %3083 = vmatpush3.bf16.msra.mxu1 %v3452_v27  ;;  %3105 = vmatpush3.bf16.msra.mxu0 %v3453_v28 }
 0x8d6   : > { %3084 = vmatprep.subr.bf16.mxu1 %v3454_v30  ;;  %3106 = vmatprep.subr.bf16.mxu0 %v3455_v26 }
 0x8d9   : > { %3085 = vmatpush3.bf16.msra.mxu1 %v3456_v32  ;;  %3107 = vmatpush3.bf16.msra.mxu0 %v3457_v35 }
 0x8da   : > { %3086 = vmatprep.subr.bf16.mxu1 %v3458_v37  ;;  %3108 = vmatprep.subr.bf16.mxu0 %v3459_v38 }
 0x8dd   : > { %3087 = vmatpush3.bf16.msra.mxu1 %v3460_v39  ;;  %3109 = vmatpush3.bf16.msra.mxu0 %v3461_v40 }
 0x8de   : > { %3088 = vmatprep.subr.bf16.mxu1 %v3462_v41  ;;  %3110 = vmatprep.subr.bf16.mxu0 %v3463_v42  ;;  %v3035_v42 = vld [vmem:[%s4754_s6] ss:$0 sm:$0xff] (!%p3033_p10) }
 0x8e1   : > { %3089 = vmatpush3.bf16.msra.mxu1 %v3464_v43  ;;  %3111 = vmatpush3.bf16.msra.mxu0 %v3465_v44 }
 0x8e2   : > { %3090 = vmatprep.subr.bf16.mxu1 %v3466_v45  ;;  %3112 = vmatprep.subr.bf16.mxu0 %v3467_v46 }
 0x8e5   : > { %3091 = vmatpush3.bf16.msra.mxu1 %v3468_v47  ;;  %3113 = vmatpush3.bf16.msra.mxu0 %v3469_v48 }
 0x8e6   : > { %3092 = vmatprep.subr.bf16.mxu1 %v3470_v49  ;;  %3114 = vmatprep.subr.bf16.mxu0 %v3471_v50 }
 0x8e9   : > { %3093 = vmatpush3.bf16.msra.mxu1 %v3472_v51  ;;  %3115 = vmatpush3.bf16.msra.mxu0 %v3473_v52 }
 0x99f   : > { %v2266_v62 = vpop.f32.mrb[28].mxu1  ;;  %v2307_v63 = vpop.f32.mrb[16].mxu0 }
 0x9a0   : > { %v2267_v58 = vadd.f32 %v2266_v62, %v2059_v57  ;;  %v2308_v31 = vadd.f32 %v2307_v63, %v2067_v59  ;;  %v2268_v0 = vpop.f32.mrb[29].mxu1  ;;  %v2309_v33 = vpop.f32.mrb[17].mxu0 }
 0x9a1   : > { %v2269_v2 = vadd.f32 %v2268_v0, %v2063_v60  ;;  %v2310_v3 = vadd.f32 %v2309_v33, %v2071_v61  ;;  %v2270_v6 = vpop.f32.mrb[30].mxu1  ;;  %v2311_v7 = vpop.f32.mrb[18].mxu0 }
 0x9a2   : > { %v2314_v8 = vmax.f32 %v2267_v58, 0.0  ;;  %v2316_v9 = vmax.f32 %v2308_v31, 0.0  ;;  %v2271_v10 = vpop.f32.mrb[31].mxu1  ;;  %v2312_v11 = vpop.f32.mrb[19].mxu0 }
 0x9a3   : > { %v2315_v4 = vmax.f32 %v2269_v2, 0.0  ;;  %v2317_v12 = vmax.f32 %v2310_v3, 0.0 }
 0x9a4   : > { %v2318_v16 = vpack.c.bf16 %v2314_v8, %v2314_v8  ;;  %v2320_v1 = vpack.c.bf16 %v2316_v9, %v2316_v9 }
 0x9a5   : > { %v2319_v14 = vpack.c.bf16 %v2315_v4, %v2315_v4  ;;  %v2321_v15 = vpack.c.bf16 %v2317_v12, %v2317_v12 }
 0x9a7   : > { %2614 = vmatprep.mubr.bf16.mxu1 %v2319_v14  ;;  %2654 = vmatprep.mubr.bf16.mxu0 %v2321_v15 }
 0x9a8   : > { %2615 = vmatmul.mubr.bf16.vlgmr.msra.gmra.mrb[32].mxu1 %v2318_v16  ;;  %2655 = vmatmul.mubr.bf16.vlgmr.msra.gmra.mrb[20].mxu0 %v2320_v1 }
 0xa7b   : > { %v3094_v18 = vpop.f32.mrb[32].mxu1  ;;  %v3116_v19 = vpop.f32.mrb[20].mxu0 }
 0xa7c   : > { %v3095_v5 = vpop.f32.mrb[33].mxu1  ;;  %v3117_v34 = vpop.f32.mrb[21].mxu0 }
 0xa7d   : > { %v3096_v21 = vadd.f32 %v3095_v5, %v3094_v18  ;;  %v3118_v22 = vadd.f32 %v3117_v34, %v3116_v19  ;;  %v3097_v23 = vpop.f32.mrb[34].mxu1  ;;  %v3119_v24 = vpop.f32.mrb[22].mxu0 }
 0xa7e   : > { %v3098_v25 = vpop.f32.mrb[35].mxu1  ;;  %v3120_v27 = vpop.f32.mrb[23].mxu0 }
 0xa7f   : > { %v2617_v28 = vadd.f32 %v3096_v21, %v2389_v20  ;;  %2667 = sbr.rel (%p3033_p10) target bundleno = 3005 (0xbbd), region = 84 }
 0xa81   : > { %v2657_v30 = vadd.f32 %v3118_v22, %v2617_v28 }
 0xa83   : > { %v2662_v26 = vadd.f32 %v2657_v30, %v4530_v29  ;;  %v3034_v29 = vld [vmem:[%s4753_s23] ss:$0 sm:$0xff] (!%p3033_p10) }
 0xa85   : > { %2663 = vst [vmem:[#allocation2] sm:$0xff] %v2662_v26  ;;  %2670 = vadd.xlane.f32.xlu0 (!%p3033_p10), %v2662_v26 }
 0xb12   : > { %v2671_v36 = vpop.xlane.xlu0 %2670 }
 0xb13   : > { %v2672_v13 = vmul.f32 0.0078125, %v2671_v36 }
 0xb15   : > { %v2673_v32 = vsub.f32 %v2662_v26, %v2672_v13 }
 0xb17   : > { %v2674_v35 = vmul.f32 %v2673_v32, %v2673_v32 }
 0xb19   : > { %2675 = vadd.xlane.f32.xlu0 %v2674_v35 }
 0xba6   : > { %v2676_v37 = vpop.xlane.xlu0 %2675 }
 0xba7   : > { %v2677_v38 = vmul.f32 0.0078125, %v2676_v37 }
 0xba9   : > { %v2678_v39 = vadd.f32 1e-05, %v2677_v38 }
 0xbab   : > { %3496 = vrsqrt.f32 %v2678_v39 }
 0xbb5   : > { %v3497_v40 = vpop.eup %3496 }
 0xbb6   : > { %v2680_v41 = vmul.f32 %v3497_v40, %v2673_v32 }
 0xbb8   : > { %v2687_v43 = vmul.f32 %v3034_v29, %v2680_v41 }
 0xbba   : > { %v2694_v44 = vadd.f32 %v3035_v42, %v2687_v43 }
 0xbbc   : > { %2695 = vst [vmem:[%s4293_s19] sm:$0xff] %v2694_v44 }
 0xbbd PF: > { %s4755_s27 = sld [smem:[#allocation23_spill]]  ;;  %s4756_s24 = sld [smem:[#allocation35_spill]] }
 0xbbe   : > { %s2710_s16 = sshll.u32 %s4293_s19, 4  ;;  %s2697_s20 = scalar_lea.sflag [#allocation5], %s4261_s21  ;;  %s2711_s16 = int_to_ptr.vmem [resolvable:$true] %s2710_s16 }
 0xbbf   : > { %s3678_s1 = scalar_lea.vmem %s2711_s16, 128  ;;  %p4757_p7 = scmp.ne.s32.totalorder %s4739_s11, 0 }
 0xbc0   : > { %p3679_p3 = scmp.ne.s32.totalorder %s2711_s16, %s3678_s1  ;;  %s3834_s29 = smov [#allocation14]  }
 0xbc1   : > { %s3682_s25 = sshll.u32 %s3834_s29, 4  ;;  %s3683_s25 = int_to_ptr.vmem [resolvable:$false] %s3682_s25 }
 0xbc2   : > { %p3680_p2 = pnand %p3679_p3, %p4757_p7  ;;  %s3684_s26 = scalar_lea.vmem %s3683_s25, 256 }
 0xbc3   : > { %s3037_s14 = sshll.u32 %s4755_s27, 7  ;;  %p3685_p12 = scmp.lt.s32.totalorder %s2711_s16, %s3683_s25 }
 0xbc4   : > { %s4625_s7 = scalar_lea.hbm %s4756_s24, %s3037_s14  ;;  %p3681_p6 = pneg %p3680_p2 }
 0xbc5   : > { %p3686_p13 = scmp.lt.s32.totalorder %s3684_s26, %s3678_s1 }
 0xbc7   : > { %p3687_p4 = por %p3686_p13, %p3685_p12 }
 0xbc9   : > { %p3688_p9 = pnand %p3687_p4, %p3681_p6 }
 0xbcb   : > { %3691 = shalt.err (!%p3688_p9)
}
 0xbcc   : > { %s3692_s21 = scalar_lea.hbm %s4625_s7, 128  ;;  %s3696_s22 = scalar_lea.hbm %s4756_s24, 256 }
 0xbcd   : > { %p3693_p0 = scmp.ne.s32.totalorder %s4625_s7, %s3692_s21  ;;  %p3697_p1 = scmp.lt.u32.totalorder %s4625_s7, %s4756_s24 }
 0xbce   : > { %p3698_p5 = scmp.lt.u32.totalorder %s3696_s22, %s3692_s21  ;;  %p3700_p3 = scmp.lt.u32.totalorder %s3692_s21, %s4625_s7 }
 0xbcf   : > { %p3694_p8 = pnand %p3693_p0, %p4757_p7 }
 0xbd0   : > { %p3699_p10 = por %p3698_p5, %p3697_p1 }
 0xbd1   : > { %p3695_p11 = pneg %p3694_p8 }
 0xbd2   : > { %p3701_p2 = por %p3700_p3, %p3699_p10 }
 0xbd4   : > { %p3702_p6 = pnand %p3701_p2, %p3695_p11 }
 0xbd6   : > { %3705 = shalt.err (!%p3702_p6)
}
 0xbd7   : > { %3225 = dma.vmem_to_hbm [thread:$0]  (%p4757_p7), %s2711_s16, 128, %s4625_s7, %s2697_s20  }
 0xbd8 PF: > { %s4758_s3 = sld [smem:[#allocation30_spill]]  ;;  %p3251_p12 = scmp.ge.s32.totalorder %s3812_s15, 2 }
 0xbd9   : > { %s2722_s10 = sand.u32 1, %s3784_s30  }
 0xbda   : > { %s2723_s6 = scalar_lea.sflag [#allocation5], %s2722_s10 }
 0xbde   : > { %p4759_p13 = scmp.ne.s32.totalorder %s4758_s3, 0 }
 0xbe0   : > { %p3247_p4 = pnand %p3251_p12, %p4759_p13 }
 0xbe2   : > { %3767 = dma.done.wait (!%p3247_p4), %s2723_s6, 128  }
 0xbe3   : > { %3769 = vsyncadd (!%p3247_p4), %s2723_s6, 4294967168  ;;  %s33_s15 = sadd.s32 1, %s3812_s15   ;;  %s4760_s14 = sld [smem:[#allocation20_spill]] }
 0xbe4   : > { %p30_p9 = scmp.ge.s32.totalorder %s33_s15, 6   ;;  %s4761_s29 = sld [smem:[#allocation27_spill]] }
 0xbe5   : > { %s4762_s11 = sld [smem:[#allocation21_spill]]  ;;  %s4763_s10 = sld [smem:[#allocation29_spill]] }
 0xbe6   : > { %s4764_s12 = sld [smem:[#allocation24_spill]]  ;;  %s4765_s8 = sld [smem:[#allocation25_spill]] }
 0xbe7   : > { %s4766_s7 = sld [smem:[#allocation26_spill]]  ;;  %s4767_s27 = smov %s3776_s28 }
 0xbe8   : > { %s4769_s30 = smov %s3788_s9  ;;  %32 = sbr.rel (!%p30_p9) target bundleno = 21 (0x15), region = 166 }
 0xbe9   : > { %s4768_s28 = smov %s4760_s14 }
 0xbeb   : > { %s4770_s9 = smov %s4762_s11  ;;  %s4771_s11 = smov %s3804_s13 }
 0xbec   : > { %s4772_s13 = smov %s4765_s8 }
 0xbed   : > { %s4773_s14 = smov %s4766_s7 }
 0xbef   :  { %2728 = vsyncpa [#allocation4], 1 }
 0xbf0   :  { %2730 = vsyncpa [#allocation4 + $0x1], 1 }
 0xbf1   :  { %2731 = vsyncpa [#allocation7], 1 }
 0xbf2   :  { %2733 = vsyncpa [#allocation7 + $0x1], 1 }
 0xbf3   :  { %2734 = vsyncpa [#allocation10], 1 }
 0xbf4   :  { %2736 = vsyncpa [#allocation10 + $0x1], 1 }
 0xbf5   :  { %2737 = vsyncpa [#allocation13], 1 }
 0xbf6   :  { %2739 = vsyncpa [#allocation13 + $0x1], 1 }
 0xbf7   :  { %2740 = vsyncpa [#allocation5], 1 }
 0xbf8   :  { %2742 = vsyncpa [#allocation5 + $0x1], 1 }

</bundles_post_ra>
